<compile_context>
chip_gen: v7x
topology: tpu7x:2x2x1
jax: 0.10.0
libtpu: 0.0.40
codegen_flags: <defaults>
</compile_context>

<pallas_src>
import functools
import itertools

import numpy as np

import jax
import jax.numpy as jnp
from jax.experimental import pallas as pl
from jax.experimental.pallas import tpu as pltpu


def _round_up(v, m):
    return ((v + m - 1) // m) * m


# ----------------------------- Pallas kernel --------------------------------
def fused_relation_kernel(xg_ref, w1_ref, b1_ref, w2_ref, b2_ref, sel_ref,
                          o_ref, *, scales_per_step):
    """One grid step processes `scales_per_step` temporal scales.

    xg_ref  : (Sb, Rp, Kp)  bf16  gathered + ReLU'd relation rows (zero-padded)
    w1_ref  : (Sb, Kp, H)   bf16  Linear-1 weight; rows >= scale*D are zero
    b1_ref  : (Sb, 1, H)    f32   Linear-1 bias
    w2_ref  : (Sb, H, Cp)   bf16  Linear-2 weight; cols >= num_class are zero
    b2_ref  : (Sb, 1, Cp)   f32   Linear-2 bias, pre-scaled by #valid relations
    sel_ref : (Sb, B, Rp)   f32   0/1 relation selector (validity folded in)
    o_ref   : (B, Cp)       f32   output; VMEM-resident accumulator over steps
    """
    step = pl.program_id(0)

    @pl.when(step == 0)
    def _init():
        o_ref[...] = jnp.zeros(o_ref.shape, o_ref.dtype)

    acc = jnp.zeros(o_ref.shape, jnp.float32)
    for s in range(scales_per_step):                 # short static unroll
        # Linear 1 (+ bias, ReLU) on all relation rows of this scale.
        h = jnp.dot(xg_ref[s], w1_ref[s],
                    preferred_element_type=jnp.float32)          # (Rp, H)
        h = jnp.maximum(h + b1_ref[s], 0.0)
        # Relation reduction BEFORE Linear 2: sel is a 0/1 row selector with
        # the validity mask folded in, so this is an exact masked row-sum and
        # shrinks the second matmul's M from Rp to B.
        hb = jnp.dot(sel_ref[s], h,
                     preferred_element_type=jnp.float32)         # (B, H)
        # Linear 2; b2 was pre-scaled by the number of summed relations.
        y = jnp.dot(hb.astype(w2_ref.dtype), w2_ref[s],
                    preferred_element_type=jnp.float32)          # (B, Cp)
        acc = acc + y + b2_ref[s]

    o_ref[...] += acc


def fused_relation_forward(xg, w1s, b1s, w2s, b2s, sel, batch, scales_per_step):
    """xg: (Sp, Rp, Kp) -> (B, Cp) summed over every scale/relation."""
    Sp, Rp, Kp = xg.shape
    H = w1s.shape[2]
    Cp = w2s.shape[2]
    Sb = scales_per_step
    n_steps = Sp // Sb

    # Per-step VMEM footprint -> explicit limit (v7x has half the VMEM of
    # v5e/v6e; 4x covers double-buffering with slack).
    step_bytes = (Sb * Rp * Kp * xg.dtype.itemsize
                  + Sb * Kp * H * w1s.dtype.itemsize
                  + Sb * H * b1s.dtype.itemsize
                  + Sb * H * Cp * w2s.dtype.itemsize
                  + Sb * Cp * b2s.dtype.itemsize
                  + Sb * batch * Rp * sel.dtype.itemsize
                  + batch * Cp * 4)
    vmem_limit = int(min(64 * 1024 * 1024, max(16 * 1024 * 1024, 4 * step_bytes)))

    kernel = functools.partial(fused_relation_kernel, scales_per_step=Sb)
    return pl.pallas_call(
        kernel,
        out_shape=jax.ShapeDtypeStruct((batch, Cp), jnp.float32),
        grid_spec=pltpu.PrefetchScalarGridSpec(
            num_scalar_prefetch=0,
            grid=(n_steps,),
            in_specs=[
                pl.BlockSpec((Sb, Rp, Kp), lambda i: (i, 0, 0)),
                pl.BlockSpec((Sb, Kp, H), lambda i: (i, 0, 0)),
                pl.BlockSpec((Sb, 1, H), lambda i: (i, 0, 0)),
                pl.BlockSpec((Sb, H, Cp), lambda i: (i, 0, 0)),
                pl.BlockSpec((Sb, 1, Cp), lambda i: (i, 0, 0)),
                pl.BlockSpec((Sb, batch, Rp), lambda i: (i, 0, 0)),
            ],
            out_specs=pl.BlockSpec((batch, Cp), lambda i: (0, 0)),
        ),
        compiler_params=pltpu.CompilerParams(
            dimension_semantics=("arbitrary",),      # reduction over scale blocks
            vmem_limit_bytes=vmem_limit),
    )(xg, w1s, b1s, w2s, b2s, sel)


# --------------------------- Module (JAX wrapper) ----------------------------
class RelationModuleMultiScalePallas:
    NUM_BOTTLENECK = 256

    def __init__(self, img_feature_dim, num_frames, num_class, key):
        self.subsample_num = 3
        self.img_feature_dim = img_feature_dim
        self.num_frames = num_frames
        self.num_class = num_class
        self.scales = list(range(num_frames, 1, -1))

        self.relations_scales = []
        self.subsample_scales = []
        for scale in self.scales:
            rels = list(itertools.combinations(range(num_frames), scale))
            self.relations_scales.append(rels)
            self.subsample_scales.append(min(self.subsample_num, len(rels)))

        # Number of relations actually summed per scale (scale 0 always uses
        # exactly its single full-length relation).
        self.n_valid = [1] + list(self.subsample_scales[1:])
        self.rmax = max(self.n_valid)

        # Padded sizes (lane-dense last dims; zero padding is exact).
        H = self.NUM_BOTTLENECK
        self.K_pad = max(128, _round_up(num_frames * img_feature_dim, 128))
        self.C_pad = max(128, _round_up(num_class, 128))

        # Scales per grid step: as many as fit a conservative per-step VMEM
        # budget (weights dominate). At toy shapes this is all scales ->
        # grid=(1,), i.e. a single step with an in-kernel unroll.
        S = len(self.scales)
        per_scale_w = (self.K_pad * H + H * self.C_pad) * 2 + (H + self.C_pad) * 4
        self.scales_per_step = max(1, min(S, (6 * 1024 * 1024) // per_scale_w))
        self.S_pad = _round_up(S, self.scales_per_step)

        # Parameter init (PyTorch-Linear-like uniform fan-in init) packed into
        # zero-padded stacked tensors; padded scales are all-zero and are also
        # excluded by the selector, so they contribute exactly nothing.
        w1s = np.zeros((self.S_pad, self.K_pad, H), np.float32)
        b1s = np.zeros((self.S_pad, 1, H), np.float32)
        w2s = np.zeros((self.S_pad, H, self.C_pad), np.float32)
        b2s = np.zeros((self.S_pad, 1, self.C_pad), np.float32)
        self.params = []
        for si, scale in enumerate(self.scales):
            k_in = scale * img_feature_dim
            k1, k2, k3, k4, key = jax.random.split(jax.random.fold_in(key, si), 5)
            lim1 = 1.0 / np.sqrt(k_in)
            lim2 = 1.0 / np.sqrt(H)
            w1 = jax.random.uniform(k1, (k_in, H), jnp.float32, -lim1, lim1)
            b1 = jax.random.uniform(k2, (1, H), jnp.float32, -lim1, lim1)
            w2 = jax.random.uniform(k3, (H, num_class), jnp.float32, -lim2, lim2)
            b2 = jax.random.uniform(k4, (1, num_class), jnp.float32, -lim2, lim2)
            self.params.append((w1, b1, w2, b2))
            w1s[si, :k_in, :] = np.asarray(w1)
            b1s[si, 0, :] = np.asarray(b1)[0]
            w2s[si, :, :num_class] = np.asarray(w2)
            # Fold the per-scale relation count into b2 once.
            b2s[si, 0, :num_class] = float(self.n_valid[si]) * np.asarray(b2)[0]

        # bf16 weights halve the dominant HBM traffic; biases stay f32 and all
        # matmuls accumulate in f32 (preferred_element_type).
        self.w1s = jnp.asarray(w1s).astype(jnp.bfloat16)
        self.w2s = jnp.asarray(w2s).astype(jnp.bfloat16)
        self.b1s = jnp.asarray(b1s)
        self.b2s = jnp.asarray(b2s)

        self._fwd_jit = jax.jit(self._fwd_impl)

    # ---------------- relation sampling (host side, numpy RNG) ---------------
    def _sampled_combos(self, rng):
        """Deterministic (seeded) analogue of np.random.choice in forward()."""
        sampled = [[self.relations_scales[0][0]]]  # scale 0: the single full combo
        for sid in range(1, len(self.scales)):
            idxs = rng.choice(len(self.relations_scales[sid]),
                              self.subsample_scales[sid], replace=False)
            sampled.append([self.relations_scales[sid][i] for i in idxs])
        return sampled

    def _frame_index_table(self, sampled):
        """(S_pad, Rmax, T) int32 frame indices; unused slots padded with frame
        0 (exact: padded feature columns hit zero rows of W1, and padded
        relation slots / scales are excluded by the selector)."""
        Sp, T = self.S_pad, self.num_frames
        tbl = np.zeros((Sp, self.rmax, T), np.int32)
        for sid, combos in enumerate(sampled):
            for r, combo in enumerate(combos):
                tbl[sid, r, :len(combo)] = np.asarray(combo, np.int32)
        return tbl

    # ------------------------------ forward ----------------------------------
    def _fwd_impl(self, x, frame_idx, w1s, b1s, w2s, b2s):
        B, T, D = x.shape
        Sp = self.S_pad
        rmax = self.rmax
        Rp = _round_up(rmax * B, 8)                   # sublane-aligned rows

        # nn.ReLU() applied once to x (elementwise -> commutes with the frame
        # gather), before the data is fanned out S*Rmax-fold; bf16 activations
        # halve the gathered-feature DMA bytes.
        xr = jnp.maximum(x, 0.0).astype(jnp.bfloat16)

        # One fused gather for every scale/relation (single XLA gather).
        g = jnp.take(xr, frame_idx, axis=1)           # (B, Sp, Rmax, T, D)
        g = jnp.transpose(g, (1, 2, 0, 3, 4))         # (Sp, Rmax, B, T, D)
        g = g.reshape(Sp, rmax * B, T * D)            # rows ordered r*B + b
        g = jnp.pad(g, ((0, 0), (0, Rp - rmax * B), (0, self.K_pad - T * D)))

        # 0/1 selector: picks valid relation rows per (scale, batch) and drops
        # padded rows / padded scales. Built at trace time -> a constant.
        sel_np = np.zeros((Sp, B, Rp), np.float32)
        for s in range(len(self.scales)):
            for r in range(self.n_valid[s]):
                for b in range(B):
                    sel_np[s, b, r * B + b] = 1.0
        sel = jnp.asarray(sel_np)

        out = fused_relation_forward(g, w1s, b1s, w2s, b2s, sel, B,
                                     self.scales_per_step)
        return out[:, :self.num_class]

    def forward(self, x, rng):
        sampled = self._sampled_combos(rng)
        frame_idx = jnp.asarray(self._frame_index_table(sampled))
        return self._fwd_jit(x, frame_idx, self.w1s, self.b1s, self.w2s, self.b2s)

    # Pure-JAX f32 reference (same sampled combos) for correctness checking.
    def forward_ref(self, x, rng):
        sampled = self._sampled_combos(rng)
        act_all = None
        for sid in range(len(self.scales)):
            w1, b1, w2, b2 = self.params[sid]
            for combo in sampled[sid]:
                g = x[:, jnp.asarray(combo, dtype=jnp.int32), :].reshape(x.shape[0], -1)
                h = jnp.maximum(jnp.maximum(g, 0.0) @ w1 + b1, 0.0)
                y = h @ w2 + b2
                act_all = y if act_all is None else act_all + y
        return act_all


# --------------------------------- main --------------------------------------
if __name__ == "__main__":
    B, T, D, C = 2, 8, 32, 16   # batch, num_frames, img_feature_dim, num_class

    key = jax.random.PRNGKey(0)
    kx, kp = jax.random.split(key)
    x = jax.random.normal(kx, (B, T, D), dtype=jnp.float32)

    module = RelationModuleMultiScalePallas(D, T, C, kp)

    # Seeded sampling so both passes use identical relation subsets.
    out = module.forward(x, np.random.RandomState(0))
    out = jax.block_until_ready(out)

    ref = module.forward_ref(x, np.random.RandomState(0))
    # bf16 weights/activations (f32 accumulation) -> relaxed tolerance.
    np.testing.assert_allclose(np.asarray(out), np.asarray(ref), rtol=2e-2, atol=2e-2)

    assert out.shape == (B, C)
    print("KERNEL_OK")
</pallas_src>

<mosaic_0001>
module attributes {stable_mosaic.version = 11 : i64} {
  func.func @fused_relation_kernel(%arg0: i32, %arg1: memref<7x8x256xbf16, #tpu.memory_space<vmem>>, %arg2: memref<7x256x256xbf16, #tpu.memory_space<vmem>>, %arg3: memref<7x1x256xf32, #tpu.memory_space<vmem>>, %arg4: memref<7x256x128xbf16, #tpu.memory_space<vmem>>, %arg5: memref<7x1x128xf32, #tpu.memory_space<vmem>>, %arg6: memref<7x2x8xf32, #tpu.memory_space<vmem>>, %arg7: memref<2x128xf32, #tpu.memory_space<vmem>>) attributes {dimension_semantics = [#tpu.dimension_semantics<arbitrary>], iteration_bounds = array<i64: 1>, scalar_prefetch = 0 : i64, scratch_operands = 0 : i64, tpu.core_type = #tpu.core_type<tc>, window_params = [{transform_indices = @transform_0, window_bounds = array<i64: 7, 8, 256>}, {transform_indices = @transform_1, window_bounds = array<i64: 7, 256, 256>}, {transform_indices = @transform_2, window_bounds = array<i64: 7, 1, 256>}, {transform_indices = @transform_3, window_bounds = array<i64: 7, 256, 128>}, {transform_indices = @transform_4, window_bounds = array<i64: 7, 1, 128>}, {transform_indices = @transform_5, window_bounds = array<i64: 7, 2, 8>}, {pipeline_mode = #tpu.pipeline_mode<synchronous>, transform_indices = @transform_6, window_bounds = array<i64: 2, 128>}]} {
    %c0_i32 = arith.constant 0 : i32
    %0 = arith.cmpi eq, %arg0, %c0_i32 : i32
    %1 = arith.extui %0 : i1 to i32
    %c0_i32_0 = arith.constant 0 : i32
    %2 = arith.cmpi ne, %1, %c0_i32_0 : i32
    scf.if %2 {
      %cst_152 = arith.constant 0.000000e+00 : f32
      %168 = vector.broadcast %cst_152 : f32 to vector<2x128xf32>
      %c0_153 = arith.constant 0 : index
      %c0_154 = arith.constant 0 : index
      %169 = vector.load %arg7[%c0_153, %c0_154] : memref<2x128xf32, #tpu.memory_space<vmem>>, vector<2x128xf32>
      tpu.vector_store %arg7[%c0_153, %c0_154], %168 {strides = array<i32>} : memref<2x128xf32, #tpu.memory_space<vmem>>, vector<2x128xf32>,
    } else {
    }
    %cst = arith.constant 0.000000e+00 : f32
    %3 = vector.broadcast %cst : f32 to vector<2x128xf32>
    %c0 = arith.constant 0 : index
    %c0_1 = arith.constant 0 : index
    %c0_2 = arith.constant 0 : index
    %4 = vector.load %arg1[%c0, %c0_1, %c0_2] : memref<7x8x256xbf16, #tpu.memory_space<vmem>>, vector<1x8x256xbf16>
    %5 = vector.shape_cast %4 : vector<1x8x256xbf16> to vector<8x256xbf16>
    %c0_3 = arith.constant 0 : index
    %c0_4 = arith.constant 0 : index
    %c0_5 = arith.constant 0 : index
    %6 = vector.load %arg2[%c0_3, %c0_4, %c0_5] : memref<7x256x256xbf16, #tpu.memory_space<vmem>>, vector<1x256x256xbf16>
    %7 = vector.shape_cast %6 : vector<1x256x256xbf16> to vector<256x256xbf16>
    %cst_6 = arith.constant dense<0.000000e+00> : vector<8x256xf32>
    %8 = tpu.matmul %5, %7, %cst_6 {dimension_numbers = #tpu.dot_dimension_numbers<[1], [0], [0], [1], [0, 0, 1, 1], [], []>} : vector<8x256xbf16>, vector<256x256xbf16>, vector<8x256xf32> -> vector<8x256xf32>
    %c0_7 = arith.constant 0 : index
    %c0_8 = arith.constant 0 : index
    %c0_9 = arith.constant 0 : index
    %9 = vector.load %arg3[%c0_7, %c0_8, %c0_9] : memref<7x1x256xf32, #tpu.memory_space<vmem>>, vector<1x1x256xf32>
    %10 = vector.shape_cast %9 : vector<1x1x256xf32> to vector<1x256xf32>
    %11 = vector.broadcast %10 : vector<1x256xf32> to vector<8x256xf32>
    %12 = arith.addf %8, %11 : vector<8x256xf32>
    %cst_10 = arith.constant 0.000000e+00 : f32
    %13 = vector.broadcast %cst_10 : f32 to vector<8x256xf32>
    %14 = arith.maximumf %12, %13 : vector<8x256xf32>
    %c0_11 = arith.constant 0 : index
    %c0_12 = arith.constant 0 : index
    %c0_13 = arith.constant 0 : index
    %15 = vector.load %arg6[%c0_11, %c0_12, %c0_13] : memref<7x2x8xf32, #tpu.memory_space<vmem>>, vector<1x2x8xf32>
    %16 = vector.shape_cast %15 : vector<1x2x8xf32> to vector<2x8xf32>
    %cst_14 = arith.constant dense<0.000000e+00> : vector<2x256xf32>
    %17 = tpu.matmul %16, %14, %cst_14 {dimension_numbers = #tpu.dot_dimension_numbers<[1], [0], [0], [1], [0, 0, 1, 1], [], []>} : vector<2x8xf32>, vector<8x256xf32>, vector<2x256xf32> -> vector<2x256xf32>
    %18 = arith.truncf %17 : vector<2x256xf32> to vector<2x256xbf16>
    %c0_15 = arith.constant 0 : index
    %c0_16 = arith.constant 0 : index
    %c0_17 = arith.constant 0 : index
    %19 = vector.load %arg4[%c0_15, %c0_16, %c0_17] : memref<7x256x128xbf16, #tpu.memory_space<vmem>>, vector<1x256x128xbf16>
    %20 = vector.shape_cast %19 : vector<1x256x128xbf16> to vector<256x128xbf16>
    %cst_18 = arith.constant dense<0.000000e+00> : vector<2x128xf32>
    %21 = tpu.matmul %18, %20, %cst_18 {dimension_numbers = #tpu.dot_dimension_numbers<[1], [0], [0], [1], [0, 0, 1, 1], [], []>} : vector<2x256xbf16>, vector<256x128xbf16>, vector<2x128xf32> -> vector<2x128xf32>
    %22 = arith.addf %3, %21 : vector<2x128xf32>
    %c0_19 = arith.constant 0 : index
    %c0_20 = arith.constant 0 : index
    %c0_21 = arith.constant 0 : index
    %23 = vector.load %arg5[%c0_19, %c0_20, %c0_21] : memref<7x1x128xf32, #tpu.memory_space<vmem>>, vector<1x1x128xf32>
    %24 = vector.shape_cast %23 : vector<1x1x128xf32> to vector<1x128xf32>
    %25 = vector.broadcast %24 : vector<1x128xf32> to vector<2x128xf32>
    %26 = arith.addf %22, %25 : vector<2x128xf32>
    %c1 = arith.constant 1 : index
    %c0_22 = arith.constant 0 : index
    %c0_23 = arith.constant 0 : index
    %27 = vector.load %arg1[%c1, %c0_22, %c0_23] : memref<7x8x256xbf16, #tpu.memory_space<vmem>>, vector<1x8x256xbf16>
    %28 = vector.shape_cast %27 : vector<1x8x256xbf16> to vector<8x256xbf16>
    %c1_24 = arith.constant 1 : index
    %c0_25 = arith.constant 0 : index
    %c0_26 = arith.constant 0 : index
    %29 = vector.load %arg2[%c1_24, %c0_25, %c0_26] : memref<7x256x256xbf16, #tpu.memory_space<vmem>>, vector<1x256x256xbf16>
    %30 = vector.shape_cast %29 : vector<1x256x256xbf16> to vector<256x256xbf16>
    %cst_27 = arith.constant dense<0.000000e+00> : vector<8x256xf32>
    %31 = tpu.matmul %28, %30, %cst_27 {dimension_numbers = #tpu.dot_dimension_numbers<[1], [0], [0], [1], [0, 0, 1, 1], [], []>} : vector<8x256xbf16>, vector<256x256xbf16>, vector<8x256xf32> -> vector<8x256xf32>
    %c1_28 = arith.constant 1 : index
    %c0_29 = arith.constant 0 : index
    %c0_30 = arith.constant 0 : index
    %32 = vector.load %arg3[%c1_28, %c0_29, %c0_30] : memref<7x1x256xf32, #tpu.memory_space<vmem>>, vector<1x1x256xf32>
    %33 = vector.shape_cast %32 : vector<1x1x256xf32> to vector<1x256xf32>
    %34 = vector.broadcast %33 : vector<1x256xf32> to vector<8x256xf32>
    %35 = arith.addf %31, %34 : vector<8x256xf32>
    %cst_31 = arith.constant 0.000000e+00 : f32
    %36 = vector.broadcast %cst_31 : f32 to vector<8x256xf32>
    %37 = arith.maximumf %35, %36 : vector<8x256xf32>
    %c1_32 = arith.constant 1 : index
    %c0_33 = arith.constant 0 : index
    %c0_34 = arith.constant 0 : index
    %38 = vector.load %arg6[%c1_32, %c0_33, %c0_34] : memref<7x2x8xf32, #tpu.memory_space<vmem>>, vector<1x2x8xf32>
    %39 = vector.shape_cast %38 : vector<1x2x8xf32> to vector<2x8xf32>
    %cst_35 = arith.constant dense<0.000000e+00> : vector<2x256xf32>
    %40 = tpu.matmul %39, %37, %cst_35 {dimension_numbers = #tpu.dot_dimension_numbers<[1], [0], [0], [1], [0, 0, 1, 1], [], []>} : vector<2x8xf32>, vector<8x256xf32>, vector<2x256xf32> -> vector<2x256xf32>
    %41 = arith.truncf %40 : vector<2x256xf32> to vector<2x256xbf16>
    %c1_36 = arith.constant 1 : index
    %c0_37 = arith.constant 0 : index
    %c0_38 = arith.constant 0 : index
    %42 = vector.load %arg4[%c1_36, %c0_37, %c0_38] : memref<7x256x128xbf16, #tpu.memory_space<vmem>>, vector<1x256x128xbf16>
    %43 = vector.shape_cast %42 : vector<1x256x128xbf16> to vector<256x128xbf16>
    %cst_39 = arith.constant dense<0.000000e+00> : vector<2x128xf32>
    %44 = tpu.matmul %41, %43, %cst_39 {dimension_numbers = #tpu.dot_dimension_numbers<[1], [0], [0], [1], [0, 0, 1, 1], [], []>} : vector<2x256xbf16>, vector<256x128xbf16>, vector<2x128xf32> -> vector<2x128xf32>
    %45 = arith.addf %26, %44 : vector<2x128xf32>
    %c1_40 = arith.constant 1 : index
    %c0_41 = arith.constant 0 : index
    %c0_42 = arith.constant 0 : index
    %46 = vector.load %arg5[%c1_40, %c0_41, %c0_42] : memref<7x1x128xf32, #tpu.memory_space<vmem>>, vector<1x1x128xf32>
    %47 = vector.shape_cast %46 : vector<1x1x128xf32> to vector<1x128xf32>
    %48 = vector.broadcast %47 : vector<1x128xf32> to vector<2x128xf32>
    %49 = arith.addf %45, %48 : vector<2x128xf32>
    %c2 = arith.constant 2 : index
    %c0_43 = arith.constant 0 : index
    %c0_44 = arith.constant 0 : index
    %50 = vector.load %arg1[%c2, %c0_43, %c0_44] : memref<7x8x256xbf16, #tpu.memory_space<vmem>>, vector<1x8x256xbf16>
    %51 = vector.shape_cast %50 : vector<1x8x256xbf16> to vector<8x256xbf16>
    %c2_45 = arith.constant 2 : index
    %c0_46 = arith.constant 0 : index
    %c0_47 = arith.constant 0 : index
    %52 = vector.load %arg2[%c2_45, %c0_46, %c0_47] : memref<7x256x256xbf16, #tpu.memory_space<vmem>>, vector<1x256x256xbf16>
    %53 = vector.shape_cast %52 : vector<1x256x256xbf16> to vector<256x256xbf16>
    %cst_48 = arith.constant dense<0.000000e+00> : vector<8x256xf32>
    %54 = tpu.matmul %51, %53, %cst_48 {dimension_numbers = #tpu.dot_dimension_numbers<[1], [0], [0], [1], [0, 0, 1, 1], [], []>} : vector<8x256xbf16>, vector<256x256xbf16>, vector<8x256xf32> -> vector<8x256xf32>
    %c2_49 = arith.constant 2 : index
    %c0_50 = arith.constant 0 : index
    %c0_51 = arith.constant 0 : index
    %55 = vector.load %arg3[%c2_49, %c0_50, %c0_51] : memref<7x1x256xf32, #tpu.memory_space<vmem>>, vector<1x1x256xf32>
    %56 = vector.shape_cast %55 : vector<1x1x256xf32> to vector<1x256xf32>
    %57 = vector.broadcast %56 : vector<1x256xf32> to vector<8x256xf32>
    %58 = arith.addf %54, %57 : vector<8x256xf32>
    %cst_52 = arith.constant 0.000000e+00 : f32
    %59 = vector.broadcast %cst_52 : f32 to vector<8x256xf32>
    %60 = arith.maximumf %58, %59 : vector<8x256xf32>
    %c2_53 = arith.constant 2 : index
    %c0_54 = arith.constant 0 : index
    %c0_55 = arith.constant 0 : index
    %61 = vector.load %arg6[%c2_53, %c0_54, %c0_55] : memref<7x2x8xf32, #tpu.memory_space<vmem>>, vector<1x2x8xf32>
    %62 = vector.shape_cast %61 : vector<1x2x8xf32> to vector<2x8xf32>
    %cst_56 = arith.constant dense<0.000000e+00> : vector<2x256xf32>
    %63 = tpu.matmul %62, %60, %cst_56 {dimension_numbers = #tpu.dot_dimension_numbers<[1], [0], [0], [1], [0, 0, 1, 1], [], []>} : vector<2x8xf32>, vector<8x256xf32>, vector<2x256xf32> -> vector<2x256xf32>
    %64 = arith.truncf %63 : vector<2x256xf32> to vector<2x256xbf16>
    %c2_57 = arith.constant 2 : index
    %c0_58 = arith.constant 0 : index
    %c0_59 = arith.constant 0 : index
    %65 = vector.load %arg4[%c2_57, %c0_58, %c0_59] : memref<7x256x128xbf16, #tpu.memory_space<vmem>>, vector<1x256x128xbf16>
    %66 = vector.shape_cast %65 : vector<1x256x128xbf16> to vector<256x128xbf16>
    %cst_60 = arith.constant dense<0.000000e+00> : vector<2x128xf32>
    %67 = tpu.matmul %64, %66, %cst_60 {dimension_numbers = #tpu.dot_dimension_numbers<[1], [0], [0], [1], [0, 0, 1, 1], [], []>} : vector<2x256xbf16>, vector<256x128xbf16>, vector<2x128xf32> -> vector<2x128xf32>
    %68 = arith.addf %49, %67 : vector<2x128xf32>
    %c2_61 = arith.constant 2 : index
    %c0_62 = arith.constant 0 : index
    %c0_63 = arith.constant 0 : index
    %69 = vector.load %arg5[%c2_61, %c0_62, %c0_63] : memref<7x1x128xf32, #tpu.memory_space<vmem>>, vector<1x1x128xf32>
    %70 = vector.shape_cast %69 : vector<1x1x128xf32> to vector<1x128xf32>
    %71 = vector.broadcast %70 : vector<1x128xf32> to vector<2x128xf32>
    %72 = arith.addf %68, %71 : vector<2x128xf32>
    %c3 = arith.constant 3 : index
    %c0_64 = arith.constant 0 : index
    %c0_65 = arith.constant 0 : index
    %73 = vector.load %arg1[%c3, %c0_64, %c0_65] : memref<7x8x256xbf16, #tpu.memory_space<vmem>>, vector<1x8x256xbf16>
    %74 = vector.shape_cast %73 : vector<1x8x256xbf16> to vector<8x256xbf16>
    %c3_66 = arith.constant 3 : index
    %c0_67 = arith.constant 0 : index
    %c0_68 = arith.constant 0 : index
    %75 = vector.load %arg2[%c3_66, %c0_67, %c0_68] : memref<7x256x256xbf16, #tpu.memory_space<vmem>>, vector<1x256x256xbf16>
    %76 = vector.shape_cast %75 : vector<1x256x256xbf16> to vector<256x256xbf16>
    %cst_69 = arith.constant dense<0.000000e+00> : vector<8x256xf32>
    %77 = tpu.matmul %74, %76, %cst_69 {dimension_numbers = #tpu.dot_dimension_numbers<[1], [0], [0], [1], [0, 0, 1, 1], [], []>} : vector<8x256xbf16>, vector<256x256xbf16>, vector<8x256xf32> -> vector<8x256xf32>
    %c3_70 = arith.constant 3 : index
    %c0_71 = arith.constant 0 : index
    %c0_72 = arith.constant 0 : index
    %78 = vector.load %arg3[%c3_70, %c0_71, %c0_72] : memref<7x1x256xf32, #tpu.memory_space<vmem>>, vector<1x1x256xf32>
    %79 = vector.shape_cast %78 : vector<1x1x256xf32> to vector<1x256xf32>
    %80 = vector.broadcast %79 : vector<1x256xf32> to vector<8x256xf32>
    %81 = arith.addf %77, %80 : vector<8x256xf32>
    %cst_73 = arith.constant 0.000000e+00 : f32
    %82 = vector.broadcast %cst_73 : f32 to vector<8x256xf32>
    %83 = arith.maximumf %81, %82 : vector<8x256xf32>
    %c3_74 = arith.constant 3 : index
    %c0_75 = arith.constant 0 : index
    %c0_76 = arith.constant 0 : index
    %84 = vector.load %arg6[%c3_74, %c0_75, %c0_76] : memref<7x2x8xf32, #tpu.memory_space<vmem>>, vector<1x2x8xf32>
    %85 = vector.shape_cast %84 : vector<1x2x8xf32> to vector<2x8xf32>
    %cst_77 = arith.constant dense<0.000000e+00> : vector<2x256xf32>
    %86 = tpu.matmul %85, %83, %cst_77 {dimension_numbers = #tpu.dot_dimension_numbers<[1], [0], [0], [1], [0, 0, 1, 1], [], []>} : vector<2x8xf32>, vector<8x256xf32>, vector<2x256xf32> -> vector<2x256xf32>
    %87 = arith.truncf %86 : vector<2x256xf32> to vector<2x256xbf16>
    %c3_78 = arith.constant 3 : index
    %c0_79 = arith.constant 0 : index
    %c0_80 = arith.constant 0 : index
    %88 = vector.load %arg4[%c3_78, %c0_79, %c0_80] : memref<7x256x128xbf16, #tpu.memory_space<vmem>>, vector<1x256x128xbf16>
    %89 = vector.shape_cast %88 : vector<1x256x128xbf16> to vector<256x128xbf16>
    %cst_81 = arith.constant dense<0.000000e+00> : vector<2x128xf32>
    %90 = tpu.matmul %87, %89, %cst_81 {dimension_numbers = #tpu.dot_dimension_numbers<[1], [0], [0], [1], [0, 0, 1, 1], [], []>} : vector<2x256xbf16>, vector<256x128xbf16>, vector<2x128xf32> -> vector<2x128xf32>
    %91 = arith.addf %72, %90 : vector<2x128xf32>
    %c3_82 = arith.constant 3 : index
    %c0_83 = arith.constant 0 : index
    %c0_84 = arith.constant 0 : index
    %92 = vector.load %arg5[%c3_82, %c0_83, %c0_84] : memref<7x1x128xf32, #tpu.memory_space<vmem>>, vector<1x1x128xf32>
    %93 = vector.shape_cast %92 : vector<1x1x128xf32> to vector<1x128xf32>
    %94 = vector.broadcast %93 : vector<1x128xf32> to vector<2x128xf32>
    %95 = arith.addf %91, %94 : vector<2x128xf32>
    %c4 = arith.constant 4 : index
    %c0_85 = arith.constant 0 : index
    %c0_86 = arith.constant 0 : index
    %96 = vector.load %arg1[%c4, %c0_85, %c0_86] : memref<7x8x256xbf16, #tpu.memory_space<vmem>>, vector<1x8x256xbf16>
    %97 = vector.shape_cast %96 : vector<1x8x256xbf16> to vector<8x256xbf16>
    %c4_87 = arith.constant 4 : index
    %c0_88 = arith.constant 0 : index
    %c0_89 = arith.constant 0 : index
    %98 = vector.load %arg2[%c4_87, %c0_88, %c0_89] : memref<7x256x256xbf16, #tpu.memory_space<vmem>>, vector<1x256x256xbf16>
    %99 = vector.shape_cast %98 : vector<1x256x256xbf16> to vector<256x256xbf16>
    %cst_90 = arith.constant dense<0.000000e+00> : vector<8x256xf32>
    %100 = tpu.matmul %97, %99, %cst_90 {dimension_numbers = #tpu.dot_dimension_numbers<[1], [0], [0], [1], [0, 0, 1, 1], [], []>} : vector<8x256xbf16>, vector<256x256xbf16>, vector<8x256xf32> -> vector<8x256xf32>
    %c4_91 = arith.constant 4 : index
    %c0_92 = arith.constant 0 : index
    %c0_93 = arith.constant 0 : index
    %101 = vector.load %arg3[%c4_91, %c0_92, %c0_93] : memref<7x1x256xf32, #tpu.memory_space<vmem>>, vector<1x1x256xf32>
    %102 = vector.shape_cast %101 : vector<1x1x256xf32> to vector<1x256xf32>
    %103 = vector.broadcast %102 : vector<1x256xf32> to vector<8x256xf32>
    %104 = arith.addf %100, %103 : vector<8x256xf32>
    %cst_94 = arith.constant 0.000000e+00 : f32
    %105 = vector.broadcast %cst_94 : f32 to vector<8x256xf32>
    %106 = arith.maximumf %104, %105 : vector<8x256xf32>
    %c4_95 = arith.constant 4 : index
    %c0_96 = arith.constant 0 : index
    %c0_97 = arith.constant 0 : index
    %107 = vector.load %arg6[%c4_95, %c0_96, %c0_97] : memref<7x2x8xf32, #tpu.memory_space<vmem>>, vector<1x2x8xf32>
    %108 = vector.shape_cast %107 : vector<1x2x8xf32> to vector<2x8xf32>
    %cst_98 = arith.constant dense<0.000000e+00> : vector<2x256xf32>
    %109 = tpu.matmul %108, %106, %cst_98 {dimension_numbers = #tpu.dot_dimension_numbers<[1], [0], [0], [1], [0, 0, 1, 1], [], []>} : vector<2x8xf32>, vector<8x256xf32>, vector<2x256xf32> -> vector<2x256xf32>
    %110 = arith.truncf %109 : vector<2x256xf32> to vector<2x256xbf16>
    %c4_99 = arith.constant 4 : index
    %c0_100 = arith.constant 0 : index
    %c0_101 = arith.constant 0 : index
    %111 = vector.load %arg4[%c4_99, %c0_100, %c0_101] : memref<7x256x128xbf16, #tpu.memory_space<vmem>>, vector<1x256x128xbf16>
    %112 = vector.shape_cast %111 : vector<1x256x128xbf16> to vector<256x128xbf16>
    %cst_102 = arith.constant dense<0.000000e+00> : vector<2x128xf32>
    %113 = tpu.matmul %110, %112, %cst_102 {dimension_numbers = #tpu.dot_dimension_numbers<[1], [0], [0], [1], [0, 0, 1, 1], [], []>} : vector<2x256xbf16>, vector<256x128xbf16>, vector<2x128xf32> -> vector<2x128xf32>
    %114 = arith.addf %95, %113 : vector<2x128xf32>
    %c4_103 = arith.constant 4 : index
    %c0_104 = arith.constant 0 : index
    %c0_105 = arith.constant 0 : index
    %115 = vector.load %arg5[%c4_103, %c0_104, %c0_105] : memref<7x1x128xf32, #tpu.memory_space<vmem>>, vector<1x1x128xf32>
    %116 = vector.shape_cast %115 : vector<1x1x128xf32> to vector<1x128xf32>
    %117 = vector.broadcast %116 : vector<1x128xf32> to vector<2x128xf32>
    %118 = arith.addf %114, %117 : vector<2x128xf32>
    %c5 = arith.constant 5 : index
    %c0_106 = arith.constant 0 : index
    %c0_107 = arith.constant 0 : index
    %119 = vector.load %arg1[%c5, %c0_106, %c0_107] : memref<7x8x256xbf16, #tpu.memory_space<vmem>>, vector<1x8x256xbf16>
    %120 = vector.shape_cast %119 : vector<1x8x256xbf16> to vector<8x256xbf16>
    %c5_108 = arith.constant 5 : index
    %c0_109 = arith.constant 0 : index
    %c0_110 = arith.constant 0 : index
    %121 = vector.load %arg2[%c5_108, %c0_109, %c0_110] : memref<7x256x256xbf16, #tpu.memory_space<vmem>>, vector<1x256x256xbf16>
    %122 = vector.shape_cast %121 : vector<1x256x256xbf16> to vector<256x256xbf16>
    %cst_111 = arith.constant dense<0.000000e+00> : vector<8x256xf32>
    %123 = tpu.matmul %120, %122, %cst_111 {dimension_numbers = #tpu.dot_dimension_numbers<[1], [0], [0], [1], [0, 0, 1, 1], [], []>} : vector<8x256xbf16>, vector<256x256xbf16>, vector<8x256xf32> -> vector<8x256xf32>
    %c5_112 = arith.constant 5 : index
    %c0_113 = arith.constant 0 : index
    %c0_114 = arith.constant 0 : index
    %124 = vector.load %arg3[%c5_112, %c0_113, %c0_114] : memref<7x1x256xf32, #tpu.memory_space<vmem>>, vector<1x1x256xf32>
    %125 = vector.shape_cast %124 : vector<1x1x256xf32> to vector<1x256xf32>
    %126 = vector.broadcast %125 : vector<1x256xf32> to vector<8x256xf32>
    %127 = arith.addf %123, %126 : vector<8x256xf32>
    %cst_115 = arith.constant 0.000000e+00 : f32
    %128 = vector.broadcast %cst_115 : f32 to vector<8x256xf32>
    %129 = arith.maximumf %127, %128 : vector<8x256xf32>
    %c5_116 = arith.constant 5 : index
    %c0_117 = arith.constant 0 : index
    %c0_118 = arith.constant 0 : index
    %130 = vector.load %arg6[%c5_116, %c0_117, %c0_118] : memref<7x2x8xf32, #tpu.memory_space<vmem>>, vector<1x2x8xf32>
    %131 = vector.shape_cast %130 : vector<1x2x8xf32> to vector<2x8xf32>
    %cst_119 = arith.constant dense<0.000000e+00> : vector<2x256xf32>
    %132 = tpu.matmul %131, %129, %cst_119 {dimension_numbers = #tpu.dot_dimension_numbers<[1], [0], [0], [1], [0, 0, 1, 1], [], []>} : vector<2x8xf32>, vector<8x256xf32>, vector<2x256xf32> -> vector<2x256xf32>
    %133 = arith.truncf %132 : vector<2x256xf32> to vector<2x256xbf16>
    %c5_120 = arith.constant 5 : index
    %c0_121 = arith.constant 0 : index
    %c0_122 = arith.constant 0 : index
    %134 = vector.load %arg4[%c5_120, %c0_121, %c0_122] : memref<7x256x128xbf16, #tpu.memory_space<vmem>>, vector<1x256x128xbf16>
    %135 = vector.shape_cast %134 : vector<1x256x128xbf16> to vector<256x128xbf16>
    %cst_123 = arith.constant dense<0.000000e+00> : vector<2x128xf32>
    %136 = tpu.matmul %133, %135, %cst_123 {dimension_numbers = #tpu.dot_dimension_numbers<[1], [0], [0], [1], [0, 0, 1, 1], [], []>} : vector<2x256xbf16>, vector<256x128xbf16>, vector<2x128xf32> -> vector<2x128xf32>
    %137 = arith.addf %118, %136 : vector<2x128xf32>
    %c5_124 = arith.constant 5 : index
    %c0_125 = arith.constant 0 : index
    %c0_126 = arith.constant 0 : index
    %138 = vector.load %arg5[%c5_124, %c0_125, %c0_126] : memref<7x1x128xf32, #tpu.memory_space<vmem>>, vector<1x1x128xf32>
    %139 = vector.shape_cast %138 : vector<1x1x128xf32> to vector<1x128xf32>
    %140 = vector.broadcast %139 : vector<1x128xf32> to vector<2x128xf32>
    %141 = arith.addf %137, %140 : vector<2x128xf32>
    %c6 = arith.constant 6 : index
    %c0_127 = arith.constant 0 : index
    %c0_128 = arith.constant 0 : index
    %142 = vector.load %arg1[%c6, %c0_127, %c0_128] : memref<7x8x256xbf16, #tpu.memory_space<vmem>>, vector<1x8x256xbf16>
    %143 = vector.shape_cast %142 : vector<1x8x256xbf16> to vector<8x256xbf16>
    %c6_129 = arith.constant 6 : index
    %c0_130 = arith.constant 0 : index
    %c0_131 = arith.constant 0 : index
    %144 = vector.load %arg2[%c6_129, %c0_130, %c0_131] : memref<7x256x256xbf16, #tpu.memory_space<vmem>>, vector<1x256x256xbf16>
    %145 = vector.shape_cast %144 : vector<1x256x256xbf16> to vector<256x256xbf16>
    %cst_132 = arith.constant dense<0.000000e+00> : vector<8x256xf32>
    %146 = tpu.matmul %143, %145, %cst_132 {dimension_numbers = #tpu.dot_dimension_numbers<[1], [0], [0], [1], [0, 0, 1, 1], [], []>} : vector<8x256xbf16>, vector<256x256xbf16>, vector<8x256xf32> -> vector<8x256xf32>
    %c6_133 = arith.constant 6 : index
    %c0_134 = arith.constant 0 : index
    %c0_135 = arith.constant 0 : index
    %147 = vector.load %arg3[%c6_133, %c0_134, %c0_135] : memref<7x1x256xf32, #tpu.memory_space<vmem>>, vector<1x1x256xf32>
    %148 = vector.shape_cast %147 : vector<1x1x256xf32> to vector<1x256xf32>
    %149 = vector.broadcast %148 : vector<1x256xf32> to vector<8x256xf32>
    %150 = arith.addf %146, %149 : vector<8x256xf32>
    %cst_136 = arith.constant 0.000000e+00 : f32
    %151 = vector.broadcast %cst_136 : f32 to vector<8x256xf32>
    %152 = arith.maximumf %150, %151 : vector<8x256xf32>
    %c6_137 = arith.constant 6 : index
    %c0_138 = arith.constant 0 : index
    %c0_139 = arith.constant 0 : index
    %153 = vector.load %arg6[%c6_137, %c0_138, %c0_139] : memref<7x2x8xf32, #tpu.memory_space<vmem>>, vector<1x2x8xf32>
    %154 = vector.shape_cast %153 : vector<1x2x8xf32> to vector<2x8xf32>
    %cst_140 = arith.constant dense<0.000000e+00> : vector<2x256xf32>
    %155 = tpu.matmul %154, %152, %cst_140 {dimension_numbers = #tpu.dot_dimension_numbers<[1], [0], [0], [1], [0, 0, 1, 1], [], []>} : vector<2x8xf32>, vector<8x256xf32>, vector<2x256xf32> -> vector<2x256xf32>
    %156 = arith.truncf %155 : vector<2x256xf32> to vector<2x256xbf16>
    %c6_141 = arith.constant 6 : index
    %c0_142 = arith.constant 0 : index
    %c0_143 = arith.constant 0 : index
    %157 = vector.load %arg4[%c6_141, %c0_142, %c0_143] : memref<7x256x128xbf16, #tpu.memory_space<vmem>>, vector<1x256x128xbf16>
    %158 = vector.shape_cast %157 : vector<1x256x128xbf16> to vector<256x128xbf16>
    %cst_144 = arith.constant dense<0.000000e+00> : vector<2x128xf32>
    %159 = tpu.matmul %156, %158, %cst_144 {dimension_numbers = #tpu.dot_dimension_numbers<[1], [0], [0], [1], [0, 0, 1, 1], [], []>} : vector<2x256xbf16>, vector<256x128xbf16>, vector<2x128xf32> -> vector<2x128xf32>
    %160 = arith.addf %141, %159 : vector<2x128xf32>
    %c6_145 = arith.constant 6 : index
    %c0_146 = arith.constant 0 : index
    %c0_147 = arith.constant 0 : index
    %161 = vector.load %arg5[%c6_145, %c0_146, %c0_147] : memref<7x1x128xf32, #tpu.memory_space<vmem>>, vector<1x1x128xf32>
    %162 = vector.shape_cast %161 : vector<1x1x128xf32> to vector<1x128xf32>
    %163 = vector.broadcast %162 : vector<1x128xf32> to vector<2x128xf32>
    %164 = arith.addf %160, %163 : vector<2x128xf32>
    %c0_148 = arith.constant 0 : index
    %c0_149 = arith.constant 0 : index
    %165 = vector.load %arg7[%c0_148, %c0_149] : memref<2x128xf32, #tpu.memory_space<vmem>>, vector<2x128xf32>
    %166 = arith.addf %165, %164 : vector<2x128xf32>
    %c0_150 = arith.constant 0 : index
    %c0_151 = arith.constant 0 : index
    %167 = vector.load %arg7[%c0_150, %c0_151] : memref<2x128xf32, #tpu.memory_space<vmem>>, vector<2x128xf32>
    tpu.vector_store %arg7[%c0_150, %c0_151], %166 {strides = array<i32>} : memref<2x128xf32, #tpu.memory_space<vmem>>, vector<2x128xf32>,
    return
  }
  func.func @transform_0(%arg0: i32) -> (i32, i32, i32) {
    %c0_i32 = arith.constant 0 : i32
    %c0_i32_0 = arith.constant 0 : i32
    %c0_i32_1 = arith.constant 0 : i32
    return %arg0, %c0_i32, %c0_i32_0 : i32, i32, i32
  }
  func.func @transform_1(%arg0: i32) -> (i32, i32, i32) {
    %c0_i32 = arith.constant 0 : i32
    %c0_i32_0 = arith.constant 0 : i32
    %c0_i32_1 = arith.constant 0 : i32
    return %arg0, %c0_i32, %c0_i32_0 : i32, i32, i32
  }
  func.func @transform_2(%arg0: i32) -> (i32, i32, i32) {
    %c0_i32 = arith.constant 0 : i32
    %c0_i32_0 = arith.constant 0 : i32
    %c0_i32_1 = arith.constant 0 : i32
    return %arg0, %c0_i32, %c0_i32_0 : i32, i32, i32
  }
  func.func @transform_3(%arg0: i32) -> (i32, i32, i32) {
    %c0_i32 = arith.constant 0 : i32
    %c0_i32_0 = arith.constant 0 : i32
    %c0_i32_1 = arith.constant 0 : i32
    return %arg0, %c0_i32, %c0_i32_0 : i32, i32, i32
  }
  func.func @transform_4(%arg0: i32) -> (i32, i32, i32) {
    %c0_i32 = arith.constant 0 : i32
    %c0_i32_0 = arith.constant 0 : i32
    %c0_i32_1 = arith.constant 0 : i32
    return %arg0, %c0_i32, %c0_i32_0 : i32, i32, i32
  }
  func.func @transform_5(%arg0: i32) -> (i32, i32, i32) {
    %c0_i32 = arith.constant 0 : i32
    %c0_i32_0 = arith.constant 0 : i32
    %c0_i32_1 = arith.constant 0 : i32
    return %arg0, %c0_i32, %c0_i32_0 : i32, i32, i32
  }
  func.func @transform_6(%arg0: i32) -> (i32, i32) {
    %c0_i32 = arith.constant 0 : i32
    %c0_i32_0 = arith.constant 0 : i32
    %c0_i32_1 = arith.constant 0 : i32
    return %c0_i32, %c0_i32_0 : i32, i32
  }
}

</mosaic_0001>

<bundles_post_ra>
// kernel: _fwd_impl.1
= control target key start
LH: loop header
LB: loop body
LE: loop exit
PB: predicated region body
PF: predicated region fallthrough
CT: control target
= control target key end

     0   :  { %11 = vsyncpa [#allocation3], 0  ;;  %s5471_s0 = inlined_call_operand.vmem [shape: bf16[7,8,256], index: 0, kind: input, shape index: {}]   ;;  %s5472_s1 = inlined_call_operand.hbm [shape: bf16[7,256,256], index: 1, kind: input, shape index: {}]   ;;  %s5473_s2 = inlined_call_operand.vmem [shape: f32[7,1,256], index: 2, kind: input, shape index: {}]   ;;  %s5474_s3 = inlined_call_operand.vmem [shape: bf16[7,256,128], index: 3, kind: input, shape index: {}]   ;;  %s5475_s4 = inlined_call_operand.vmem [shape: f32[7,1,128], index: 4, kind: input, shape index: {}]   ;;  %s5476_s5 = inlined_call_operand.vmem [shape: f32[7,2,8], index: 5, kind: input, shape index: {}]   ;;  %s5477_s6 = inlined_call_operand.hbm [shape: f32[2,128], index: 6, kind: output, shape index: {}]  }
   0x1   :  { %12 = vsyncpa [#allocation4], 0  ;;  %s4909_s21 = smov [#allocation2]   ;;  %s4861_s25 = scalar_lea.hbm %s5472_s1, 28672 }
   0x2   :  { %s20_s22 = sshll.u32 %s4909_s21, 4  ;;  %p4862_p0 = scmp.ne.s32.totalorder %s5472_s1, %s4861_s25  ;;  %s21_s22 = int_to_ptr.vmem [resolvable:$true] %s20_s22 }
   0x3   :  { %p4865_p1 = scmp.lt.u32.totalorder %s4861_s25, %s5472_s1 }
   0x5   :  { %p4867_p2 = pnand %p4865_p1, %p4862_p0 }
   0x7   :  { %4870 = shalt.err (!%p4867_p2)
}
   0x8   :  { %s4871_s30 = scalar_lea.vmem %s21_s22, 28672  ;;  %p4876_p4 = scmp.lt.s32.totalorder %s21_s22, %s21_s22 }
   0x9   :  { %p4872_p3 = scmp.ne.s32.totalorder %s21_s22, %s4871_s30  ;;  %p4877_p5 = scmp.lt.s32.totalorder %s4871_s30, %s4871_s30 }
   0xb   :  { %p4878_p6 = por %p4877_p5, %p4876_p4 }
   0xd   :  { %p4879_p7 = pnand %p4878_p6, %p4872_p3 }
   0xf   :  { %4882 = shalt.err (!%p4879_p7)
}
  0x10   :  { %s4910_s7 = smov 128   ;;  %s4911_s8 = smov 8  }
  0x11   :  { %26 = dma.hbm_to_vmem [thread:$0]  %s5472_s1, 28672, %s21_s22, [#allocation3], %s4910_s7, %s4910_s7, %s4911_s8  }
  0x12   :  { %4905 = dma.done.wait [#allocation3], 28672  }
  0x13   :  { %4906 = vsyncadd [#allocation3], 4294938624  ;;  %v4399_v0 = vld [vmem:[#allocation2 + $0x4] ss:$8 sps:$4 sm:$0xff]   ;;  %v4401_v1 = vld [vmem:[#allocation2] ss:$8 sps:$4 sm:$0xff]   ;;  %v79_v50 = vlaneseq }
  0x14   :  { %256 = vmatprep.subr.bf16.mxu0 %v4399_v0  ;;  %v4402_v2 = vld [vmem:[#allocation2 + $0x14] ss:$8 sps:$4 sm:$0xff]   ;;  %v4404_v3 = vld [vmem:[#allocation2 + $0x10] ss:$8 sps:$4 sm:$0xff]   ;;  %v4405_v4 = vld [vmem:[#allocation2 + $0x24] ss:$8 sps:$4 sm:$0xff]  }
  0x15   :  { %257 = vmatpush1.bf16.msra.mxu0 %v4401_v1  ;;  %v4407_v5 = vld [vmem:[#allocation2 + $0x20] ss:$8 sps:$4 sm:$0xff]   ;;  %v4408_v6 = vld [vmem:[#allocation2 + $0x34] ss:$8 sps:$4 sm:$0xff]   ;;  %v4410_v7 = vld [vmem:[#allocation2 + $0x30] ss:$8 sps:$4 sm:$0xff]  }
  0x16   :  { %258 = vmatprep.subr.bf16.mxu0 %v4402_v2  ;;  %v4411_v8 = vld [vmem:[#allocation2 + $0x44] ss:$8 sps:$4 sm:$0xff]   ;;  %v4413_v9 = vld [vmem:[#allocation2 + $0x40] ss:$8 sps:$4 sm:$0xff]   ;;  %v4414_v10 = vld [vmem:[#allocation2 + $0x54] ss:$8 sps:$4 sm:$0xff]  }
  0x17   :  { %v4416_v11 = vld [vmem:[#allocation2 + $0x50] ss:$8 sps:$4 sm:$0xff]   ;;  %v4417_v12 = vld [vmem:[#allocation2 + $0x64] ss:$8 sps:$4 sm:$0xff]   ;;  %v4419_v13 = vld [vmem:[#allocation2 + $0x60] ss:$8 sps:$4 sm:$0xff]  }
  0x18   :  { %v44_v14 = vld [vmem:[%s5471_s0] sm:$0xff]  ;;  %v4420_v15 = vld [vmem:[#allocation2 + $0x74] ss:$8 sps:$4 sm:$0xff]   ;;  %v4422_v17 = vld [vmem:[#allocation2 + $0x70] ss:$8 sps:$4 sm:$0xff]   ;;  %v4912_v35 = vmov 0.0  }
  0x19   :  { %259 = vmatpush1.bf16.msra.mxu0 %v4404_v3  ;;  %v3661_v16 = vcombine.high %v44_v14, %v44_v14  ;;  %v4423_v18 = vld [vmem:[#allocation2 + $0x84] ss:$8 sps:$4 sm:$0xff]   ;;  %v4425_v19 = vld [vmem:[#allocation2 + $0x80] ss:$8 sps:$4 sm:$0xff]   ;;  %v4426_v20 = vld [vmem:[#allocation2 + $0x94] ss:$8 sps:$4 sm:$0xff]   ;;  %v3660_v34 = vcombine.low %v44_v14, %v44_v14 }
  0x1a   :  { %260 = vmatprep.subr.bf16.mxu0 %v4405_v4  ;;  %v4428_v21 = vld [vmem:[#allocation2 + $0x90] ss:$8 sps:$4 sm:$0xff]   ;;  %v4429_v22 = vld [vmem:[#allocation2 + $0xa4] ss:$8 sps:$4 sm:$0xff]   ;;  %v4431_v23 = vld [vmem:[#allocation2 + $0xa0] ss:$8 sps:$4 sm:$0xff]  }
  0x1b   :  { %288 = vmatprep.mubr.bf16.mxu0 %v3661_v16  ;;  %v4432_v24 = vld [vmem:[#allocation2 + $0xb4] ss:$8 sps:$4 sm:$0xff]   ;;  %v4434_v25 = vld [vmem:[#allocation2 + $0xb0] ss:$8 sps:$4 sm:$0xff]   ;;  %v4435_v26 = vld [vmem:[#allocation2 + $0xc4] ss:$8 sps:$4 sm:$0xff]  }
  0x1c   :  { %v4437_v27 = vld [vmem:[#allocation2 + $0xc0] ss:$8 sps:$4 sm:$0xff]   ;;  %v4438_v28 = vld [vmem:[#allocation2 + $0xd4] ss:$8 sps:$4 sm:$0xff]   ;;  %v4440_v29 = vld [vmem:[#allocation2 + $0xd0] ss:$8 sps:$4 sm:$0xff]  }
  0x1d   :  { %261 = vmatpush1.bf16.msra.mxu0 %v4407_v5  ;;  %v4441_v30 = vld [vmem:[#allocation2 + $0xe4] ss:$8 sps:$4 sm:$0xff]   ;;  %v4443_v31 = vld [vmem:[#allocation2 + $0xe0] ss:$8 sps:$4 sm:$0xff]   ;;  %v4444_v32 = vld [vmem:[#allocation2 + $0xf4] ss:$8 sps:$4 sm:$0xff]  }
  0x1e   :  { %262 = vmatprep.subr.bf16.mxu0 %v4408_v6  ;;  %v4446_v33 = vld [vmem:[#allocation2 + $0xf0] ss:$8 sps:$4 sm:$0xff]   ;;  %43 = vst [vmem:[#allocation5] sm:$0x3] %v4912_v35  ;;  %v4449_v36 = vld [vmem:[%s5474_s3 + $0x40] sm:$0xff]   ;;  %v4451_v38 = vld [vmem:[%s5474_s3 + $0x48] sm:$0xff]  }
  0x1f   :  { %v4450_v37 = vld [vmem:[%s5474_s3] sm:$0xff]   ;;  %4240 = vmatprep.subr.bf16.mxu1 %v4449_v36  ;;  %v4452_v39 = vld [vmem:[%s5474_s3 + $0x8] sm:$0xff]   ;;  %v4453_v40 = vld [vmem:[%s5474_s3 + $0x50] sm:$0xff]   ;;  %v80_v51 = vshrl.u32 %v79_v50, 7  ;;  %vm300_vm0 = vcmask 64512  }
  0x20   :  { %4241 = vmatpush3.bf16.msra.mxu1 %v4450_v37  ;;  %v4454_v41 = vld [vmem:[%s5474_s3 + $0x10] sm:$0xff]   ;;  %v4455_v42 = vld [vmem:[%s5474_s3 + $0x58] sm:$0xff]   ;;  %v4457_v44 = vld [vmem:[%s5474_s3 + $0x60] sm:$0xff]  }
  0x21   :  { %263 = vmatpush1.bf16.msra.mxu0 %v4410_v7  ;;  %4242 = vmatprep.subr.bf16.mxu1 %v4451_v38  ;;  %v4456_v43 = vld [vmem:[%s5474_s3 + $0x18] sm:$0xff]   ;;  %v4458_v45 = vld [vmem:[%s5474_s3 + $0x20] sm:$0xff]   ;;  %v4459_v46 = vld [vmem:[%s5474_s3 + $0x68] sm:$0xff]   ;;  %v5008_v52 = vsub.s32 0, %v80_v51  ;;  %v5013_v54 = vsub.s32 1, %v80_v51 }
  0x22   :  { %264 = vmatprep.subr.bf16.mxu0 %v4411_v8  ;;  %v4460_v47 = vld [vmem:[%s5474_s3 + $0x28] sm:$0xff]   ;;  %v4461_v48 = vld [vmem:[%s5474_s3 + $0x70] sm:$0xff]   ;;  %v77_v53 = vld [vmem:[%s5473_s2] sm:$0x3] }
  0x23   :  { %v4462_v49 = vld [vmem:[%s5474_s3 + $0x30] sm:$0xff]   ;;  %v82_v55 = vrot.slane %v77_v53, %v5008_v52  ;;  %v86_v56 = vrot.slane %v77_v53, %v5013_v54  ;;  %v299_v1 = vld [vmem:[%s5476_s5] sm:$0x3]  ;;  %v4463_v2 = vld [vmem:[%s5474_s3 + $0x78] sm:$0xff]  }
  0x24   :  { %4243 = vmatpush3.bf16.msra.mxu1 %v4452_v39  ;;  %v4464_v3 = vld [vmem:[%s5474_s3 + $0x38] sm:$0xff]   ;;  %v4467_v4 = vld [vmem:[#allocation2 + $0x104] ss:$8 sps:$4 sm:$0xff]   ;;  %v4501_v36 = vld [vmem:[#allocation2 + $0x1c0] ss:$8 sps:$4 sm:$0xff]  }
  0x25   :  { %265 = vmatpush1.bf16.msra.mxu0 %v4413_v9  ;;  %4244 = vmatprep.subr.bf16.mxu1 %v4453_v40  ;;  %v5031_v5 = vld [vmem:[%s5471_s0 + $0x8] sm:$0xff]  ;;  %v4476_v16 = vld [vmem:[#allocation2 + $0x134] ss:$8 sps:$4 sm:$0xff]   ;;  %v4504_v38 = vld [vmem:[#allocation2 + $0x1d0] ss:$8 sps:$4 sm:$0xff]  }
  0x26   :  { %266 = vmatprep.subr.bf16.mxu0 %v4414_v10  ;;  %v4465_v9 = vld [vmem:[#allocation2 + $0x100] ss:$8 sps:$4 sm:$0xff]   ;;  %v3715_v10 = vcombine.high %v5031_v5, %v5031_v5  ;;  %v4473_v14 = vld [vmem:[#allocation2 + $0x124] ss:$8 sps:$4 sm:$0xff]   ;;  %v4506_v37 = vld [vmem:[#allocation2 + $0x1d4] ss:$8 sps:$4 sm:$0xff]  }
  0x27   :  { %v4509_v39 = vld [vmem:[#allocation2 + $0x1e4] ss:$8 sps:$4 sm:$0xff]   ;;  %v4507_v40 = vld [vmem:[#allocation2 + $0x1e0] ss:$8 sps:$4 sm:$0xff]   ;;  %v4526_v50 = vld [vmem:[#allocation2 + $0x234] ss:$8 sps:$4 sm:$0xff]  }
  0x28   :  { %4245 = vmatpush3.bf16.msra.mxu1 %v4454_v41  ;;  %v4512_v41 = vld [vmem:[#allocation2 + $0x1f4] ss:$8 sps:$4 sm:$0xff]   ;;  %v4524_v51 = vld [vmem:[#allocation2 + $0x230] ss:$8 sps:$4 sm:$0xff]   ;;  %v4529_v53 = vld [vmem:[#allocation2 + $0x244] ss:$8 sps:$4 sm:$0xff]  }
  0x29   :  { %267 = vmatpush1.bf16.msra.mxu0 %v4416_v11  ;;  %4246 = vmatprep.subr.bf16.mxu1 %v4455_v42  ;;  %v4510_v42 = vld [vmem:[#allocation2 + $0x1f0] ss:$8 sps:$4 sm:$0xff]  }
  0x2a   :  { %268 = vmatprep.subr.bf16.mxu0 %v4417_v12  ;;  %v4470_v12 = vld [vmem:[#allocation2 + $0x114] ss:$8 sps:$4 sm:$0xff]  }
  0x2c   :  { %4247 = vmatpush3.bf16.msra.mxu1 %v4456_v43  ;;  %v3714_v43 = vcombine.low %v5031_v5, %v5031_v5  ;;  %v4548_v5 = vld [vmem:[#allocation2 + $0x2b0] ss:$8 sps:$4 sm:$0xff]  }
  0x2d   :  { %269 = vmatpush1.bf16.msra.mxu0 %v4419_v13  ;;  %4248 = vmatprep.subr.bf16.mxu1 %v4457_v44  ;;  %v4468_v13 = vld [vmem:[#allocation2 + $0x110] ss:$8 sps:$4 sm:$0xff]   ;;  %v4515_v44 = vld [vmem:[#allocation2 + $0x200] ss:$8 sps:$4 sm:$0xff]  }
  0x2e   :  { %270 = vmatprep.subr.bf16.mxu0 %v4420_v15  ;;  %v4471_v15 = vld [vmem:[#allocation2 + $0x120] ss:$8 sps:$4 sm:$0xff]  }
  0x30   :  { %4249 = vmatpush3.bf16.msra.mxu1 %v4458_v45  ;;  %v4517_v45 = vld [vmem:[#allocation2 + $0x204] ss:$8 sps:$4 sm:$0xff]  }
  0x31   :  { %271 = vmatpush1.bf16.msra.mxu0 %v4422_v17  ;;  %4250 = vmatprep.subr.bf16.mxu1 %v4459_v46  ;;  %v4474_v17 = vld [vmem:[#allocation2 + $0x130] ss:$8 sps:$4 sm:$0xff]   ;;  %v4520_v46 = vld [vmem:[#allocation2 + $0x214] ss:$8 sps:$4 sm:$0xff]  }
  0x32   :  { %272 = vmatprep.subr.bf16.mxu0 %v4423_v18  ;;  %v4479_v18 = vld [vmem:[#allocation2 + $0x144] ss:$8 sps:$4 sm:$0xff]  }
  0x34   :  { %4251 = vmatpush3.bf16.msra.mxu1 %v4460_v47  ;;  %v4518_v47 = vld [vmem:[#allocation2 + $0x210] ss:$8 sps:$4 sm:$0xff]  }
  0x35   :  { %273 = vmatpush1.bf16.msra.mxu0 %v4425_v19  ;;  %4252 = vmatprep.subr.bf16.mxu1 %v4461_v48  ;;  %v4477_v19 = vld [vmem:[#allocation2 + $0x140] ss:$8 sps:$4 sm:$0xff]   ;;  %v4523_v48 = vld [vmem:[#allocation2 + $0x224] ss:$8 sps:$4 sm:$0xff]  }
  0x36   :  { %274 = vmatprep.subr.bf16.mxu0 %v4426_v20  ;;  %v4482_v20 = vld [vmem:[#allocation2 + $0x154] ss:$8 sps:$4 sm:$0xff]  }
  0x38   :  { %4253 = vmatpush3.bf16.msra.mxu1 %v4462_v49  ;;  %v4521_v49 = vld [vmem:[#allocation2 + $0x220] ss:$8 sps:$4 sm:$0xff]  }
  0x39   :  { %275 = vmatpush1.bf16.msra.mxu0 %v4428_v21  ;;  %4254 = vmatprep.subr.bf16.mxu1 %v4463_v2  ;;  %v4480_v21 = vld [vmem:[#allocation2 + $0x150] ss:$8 sps:$4 sm:$0xff]   ;;  %v4547_v2 = vld [vmem:[#allocation2 + $0x2a4] ss:$8 sps:$4 sm:$0xff]  }
  0x3a   :  { %276 = vmatprep.subr.bf16.mxu0 %v4429_v22  ;;  %v4485_v22 = vld [vmem:[#allocation2 + $0x164] ss:$8 sps:$4 sm:$0xff]  }
  0x3c   :  { %4255 = vmatpush3.bf16.msra.mxu1 %v4464_v3  ;;  %v4545_v3 = vld [vmem:[#allocation2 + $0x2a0] ss:$8 sps:$4 sm:$0xff]  }
  0x3d   :  { %277 = vmatpush1.bf16.msra.mxu0 %v4431_v23  ;;  %767 = vmatprep.subr.bf16.mxu1 %v4467_v4  ;;  %v4483_v23 = vld [vmem:[#allocation2 + $0x160] ss:$8 sps:$4 sm:$0xff]   ;;  %v4550_v4 = vld [vmem:[#allocation2 + $0x2b4] ss:$8 sps:$4 sm:$0xff]  }
  0x3e   :  { %278 = vmatprep.subr.bf16.mxu0 %v4432_v24  ;;  %v4488_v24 = vld [vmem:[#allocation2 + $0x174] ss:$8 sps:$4 sm:$0xff]  }
  0x41   :  { %279 = vmatpush1.bf16.msra.mxu0 %v4434_v25  ;;  %v4486_v25 = vld [vmem:[#allocation2 + $0x170] ss:$8 sps:$4 sm:$0xff]  }
  0x42   :  { %280 = vmatprep.subr.bf16.mxu0 %v4435_v26  ;;  %v4491_v26 = vld [vmem:[#allocation2 + $0x184] ss:$8 sps:$4 sm:$0xff]  }
  0x45   :  { %281 = vmatpush1.bf16.msra.mxu0 %v4437_v27  ;;  %v4489_v27 = vld [vmem:[#allocation2 + $0x180] ss:$8 sps:$4 sm:$0xff]  }
  0x46   :  { %282 = vmatprep.subr.bf16.mxu0 %v4438_v28  ;;  %v4494_v28 = vld [vmem:[#allocation2 + $0x194] ss:$8 sps:$4 sm:$0xff]  }
  0x49   :  { %283 = vmatpush1.bf16.msra.mxu0 %v4440_v29  ;;  %v4492_v29 = vld [vmem:[#allocation2 + $0x190] ss:$8 sps:$4 sm:$0xff]  }
  0x4a   :  { %284 = vmatprep.subr.bf16.mxu0 %v4441_v30  ;;  %v4497_v30 = vld [vmem:[#allocation2 + $0x1a4] ss:$8 sps:$4 sm:$0xff]  }
  0x4d   :  { %285 = vmatpush1.bf16.msra.mxu0 %v4443_v31  ;;  %v4495_v31 = vld [vmem:[#allocation2 + $0x1a0] ss:$8 sps:$4 sm:$0xff]  }
  0x4e   :  { %286 = vmatprep.subr.bf16.mxu0 %v4444_v32  ;;  %v4500_v32 = vld [vmem:[#allocation2 + $0x1b4] ss:$8 sps:$4 sm:$0xff]  }
  0x51   :  { %287 = vmatpush1.bf16.msra.mxu0 %v4446_v33  ;;  %v4498_v33 = vld [vmem:[#allocation2 + $0x1b0] ss:$8 sps:$4 sm:$0xff]  }
  0x54   :  { %289 = vmatmul.mubr.bf16.vlgmr.msra.gmra.mrb[0].mxu0 %v3660_v34  ;;  %v4503_v34 = vld [vmem:[#allocation2 + $0x1c4] ss:$8 sps:$4 sm:$0xff]  }
  0x55   :  { %368 = vmatprep.mubr.f32.mxu0 %v4912_v35 }
 0x127   :  { %v290_v57 = vpop.f32.mrb[0].mxu0 }
 0x128   :  { %v291_v58 = vadd.f32 %v290_v57, %v82_v55  ;;  %v292_v59 = vpop.f32.mrb[1].mxu0  ;;  %v4527_v55 = vld [vmem:[#allocation2 + $0x240] ss:$8 sps:$4 sm:$0xff]   ;;  %v4530_v57 = vld [vmem:[#allocation2 + $0x250] ss:$8 sps:$4 sm:$0xff]  }
 0x129   :  { %v293_v60 = vadd.f32 %v292_v59, %v86_v56  ;;  %v294_v61 = vpop.f32.mrb[2].mxu0  ;;  %v4532_v56 = vld [vmem:[#allocation2 + $0x254] ss:$8 sps:$4 sm:$0xff]   ;;  %v4533_v59 = vld [vmem:[#allocation2 + $0x260] ss:$8 sps:$4 sm:$0xff]  }
 0x12a   :  { %v295_v62 = vpop.f32.mrb[3].mxu0  ;;  %v297_v0 = vmax.f32 %v291_v58, 0.0  ;;  %v4535_v58 = vld [vmem:[#allocation2 + $0x264] ss:$8 sps:$4 sm:$0xff]   ;;  %v4536_v61 = vld [vmem:[#allocation2 + $0x270] ss:$8 sps:$4 sm:$0xff]  }
 0x12b   :  { %v298_v63 = vmax.f32 %v293_v60, 0.0  ;;  %v4538_v60 = vld [vmem:[#allocation2 + $0x274] ss:$8 sps:$4 sm:$0xff]   ;;  %v4541_v62 = vld [vmem:[#allocation2 + $0x284] ss:$8 sps:$4 sm:$0xff]  }
 0x12d   :  { %304 = vmatprep.subr.mxu0 %v298_v63  ;;  %v4539_v63 = vld [vmem:[#allocation2 + $0x280] ss:$8 sps:$4 sm:$0xff]  }
 0x12e   :  { %305 = vmatpush1.msra.mxu0 %v297_v0  ;;  %v4544_v0 = vld [vmem:[#allocation2 + $0x294] ss:$8 sps:$4 sm:$0xff]  }
 0x12f   :  { %3694 = vmatmul.mubr.msk.f32.vlgmr.msra.gmra.mrb[4].mxu0 %vm300_vm0, %v299_v1  ;;  %v4542_v1 = vld [vmem:[#allocation2 + $0x290] ss:$8 sps:$4 sm:$0xff]  }
 0x130   :  { %879 = vmatprep.mubr.f32.mxu0 %v4912_v35 }
 0x202   :  { %v370_v6 = vpop.f32.mrb[4].mxu0 }
 0x203   :  { %v372_v7 = vpop.f32.mrb[5].mxu0  ;;  %v375_v11 = vpack.c.bf16 %v370_v6, %v370_v6  ;;  %v4553_v6 = vld [vmem:[#allocation2 + $0x2c4] ss:$8 sps:$4 sm:$0xff]  }
 0x204   :  { %v376_v8 = vpack.c.bf16 %v372_v7, %v372_v7  ;;  %v4551_v7 = vld [vmem:[#allocation2 + $0x2c0] ss:$8 sps:$4 sm:$0xff]  }
 0x206   :  { %544 = vmatprep.mubr.bf16.mxu1 %v376_v8  ;;  %v4556_v8 = vld [vmem:[#allocation2 + $0x2d4] ss:$8 sps:$4 sm:$0xff]  }
 0x207   :  { %545 = vmatmul.mubr.bf16.vlgmr.msra.gmra.mrb[0].mxu1 %v375_v11  ;;  %v4557_v11 = vld [vmem:[#allocation2 + $0x2e0] ss:$8 sps:$4 sm:$0xff]  }
 0x208   :  { %768 = vmatpush1.bf16.msra.mxu1 %v4465_v9  ;;  %799 = vmatprep.mubr.bf16.mxu1 %v3715_v10  ;;  %v4554_v9 = vld [vmem:[#allocation2 + $0x2d0] ss:$8 sps:$4 sm:$0xff]   ;;  %v4559_v10 = vld [vmem:[#allocation2 + $0x2e4] ss:$8 sps:$4 sm:$0xff]  }
 0x209   :  { %769 = vmatprep.subr.bf16.mxu1 %v4470_v12  ;;  %v4562_v12 = vld [vmem:[#allocation2 + $0x2f4] ss:$8 sps:$4 sm:$0xff]  }
 0x20c   :  { %770 = vmatpush1.bf16.msra.mxu1 %v4468_v13  ;;  %v4560_v13 = vld [vmem:[#allocation2 + $0x2f0] ss:$8 sps:$4 sm:$0xff]  }
 0x20d   :  { %771 = vmatprep.subr.bf16.mxu1 %v4473_v14  ;;  %v3800_v14 = vld [vmem:[%s5471_s0 + $0x10] sm:$0xff] }
 0x210   :  { %772 = vmatpush1.bf16.msra.mxu1 %v4471_v15  ;;  %v3803_v15 = vcombine.high %v3800_v14, %v3800_v14 }
 0x211   :  { %773 = vmatprep.subr.bf16.mxu1 %v4476_v16  ;;  %v3802_v16 = vcombine.low %v3800_v14, %v3800_v14  ;;  %v4590_v14 = vld [vmem:[%s5474_s3 + $0x120] sm:$0xff]  }
 0x214   :  { %774 = vmatpush1.bf16.msra.mxu1 %v4474_v17 }
 0x215   :  { %775 = vmatprep.subr.bf16.mxu1 %v4479_v18 }
 0x218   :  { %776 = vmatpush1.bf16.msra.mxu1 %v4477_v19 }
 0x219   :  { %777 = vmatprep.subr.bf16.mxu1 %v4482_v20 }
 0x21c   :  { %778 = vmatpush1.bf16.msra.mxu1 %v4480_v21 }
 0x21d   :  { %779 = vmatprep.subr.bf16.mxu1 %v4485_v22  ;;  %v3713_v22 = vld [vmem:[%s5473_s2 + $0x2] sm:$0x3] }
 0x220   :  { %780 = vmatpush1.bf16.msra.mxu1 %v4483_v23  ;;  %v593_v23 = vrot.slane %v3713_v22, %v5008_v52 }
 0x221   :  { %781 = vmatprep.subr.bf16.mxu1 %v4488_v24  ;;  %v597_v24 = vrot.slane %v3713_v22, %v5013_v54  ;;  %v4599_v22 = vld [vmem:[#allocation2 + $0x304] ss:$8 sps:$4 sm:$0xff]  }
 0x224   :  { %782 = vmatpush1.bf16.msra.mxu1 %v4486_v25 }
 0x225   :  { %783 = vmatprep.subr.bf16.mxu1 %v4491_v26 }
 0x228   :  { %784 = vmatpush1.bf16.msra.mxu1 %v4489_v27 }
 0x229   :  { %785 = vmatprep.subr.bf16.mxu1 %v4494_v28 }
 0x22c   :  { %786 = vmatpush1.bf16.msra.mxu1 %v4492_v29 }
 0x22d   :  { %787 = vmatprep.subr.bf16.mxu1 %v4497_v30 }
 0x230   :  { %788 = vmatpush1.bf16.msra.mxu1 %v4495_v31 }
 0x231   :  { %789 = vmatprep.subr.bf16.mxu1 %v4500_v32  ;;  %v4565_v32 = vld [vmem:[%s5474_s3 + $0xc0] sm:$0xff]  }
 0x234   :  { %790 = vmatpush1.bf16.msra.mxu1 %v4498_v33 }
 0x235   :  { %791 = vmatprep.subr.bf16.mxu1 %v4503_v34  ;;  %v3748_v34 = vld [vmem:[%s5476_s5 + $0x2] sm:$0x3] }
 0x238   :  { %792 = vmatpush1.bf16.msra.mxu1 %v4501_v36  ;;  %v4566_v36 = vld [vmem:[%s5474_s3 + $0x80] sm:$0xff]  }
 0x239   :  { %793 = vmatprep.subr.bf16.mxu1 %v4506_v37  ;;  %v4567_v37 = vld [vmem:[%s5474_s3 + $0xc8] sm:$0xff]  }
 0x23c   :  { %794 = vmatpush1.bf16.msra.mxu1 %v4504_v38  ;;  %v4568_v38 = vld [vmem:[%s5474_s3 + $0x88] sm:$0xff]  }
 0x23d   :  { %795 = vmatprep.subr.bf16.mxu1 %v4509_v39  ;;  %v4569_v39 = vld [vmem:[%s5474_s3 + $0xd0] sm:$0xff]  }
 0x240   :  { %796 = vmatpush1.bf16.msra.mxu1 %v4507_v40  ;;  %v4570_v40 = vld [vmem:[%s5474_s3 + $0x90] sm:$0xff]  }
 0x241   :  { %797 = vmatprep.subr.bf16.mxu1 %v4512_v41  ;;  %v4571_v41 = vld [vmem:[%s5474_s3 + $0xd8] sm:$0xff]  }
 0x244   :  { %798 = vmatpush1.bf16.msra.mxu1 %v4510_v42  ;;  %v4572_v42 = vld [vmem:[%s5474_s3 + $0x98] sm:$0xff]  }
 0x245   :  { %1282 = vmatprep.subr.bf16.mxu1 %v4517_v45  ;;  %v4575_v45 = vld [vmem:[%s5474_s3 + $0xe8] sm:$0xff]  }
 0x247   :  { %800 = vmatmul.mubr.bf16.vlgmr.msra.gmra.mrb[4].mxu1 %v3714_v43  ;;  %v4573_v43 = vld [vmem:[%s5474_s3 + $0xe0] sm:$0xff]  }
 0x248   :  { %1283 = vmatpush1.bf16.msra.mxu1 %v4515_v44  ;;  %1314 = vmatprep.mubr.bf16.mxu1 %v3803_v15  ;;  %v4574_v44 = vld [vmem:[%s5474_s3 + $0xa0] sm:$0xff]   ;;  %v4591_v15 = vld [vmem:[%s5474_s3 + $0x168] sm:$0xff]  }
 0x249   :  { %1284 = vmatprep.subr.bf16.mxu1 %v4520_v46  ;;  %v4576_v46 = vld [vmem:[%s5474_s3 + $0xa8] sm:$0xff]  }
 0x24c   :  { %1285 = vmatpush1.bf16.msra.mxu1 %v4518_v47  ;;  %v4577_v47 = vld [vmem:[%s5474_s3 + $0xf0] sm:$0xff]  }
 0x24d   :  { %1286 = vmatprep.subr.bf16.mxu1 %v4523_v48  ;;  %v4578_v48 = vld [vmem:[%s5474_s3 + $0xb0] sm:$0xff]  }
 0x250   :  { %1287 = vmatpush1.bf16.msra.mxu1 %v4521_v49  ;;  %v4579_v49 = vld [vmem:[%s5474_s3 + $0xf8] sm:$0xff]  }
 0x251   :  { %1288 = vmatprep.subr.bf16.mxu1 %v4526_v50  ;;  %v4580_v50 = vld [vmem:[%s5474_s3 + $0xb8] sm:$0xff]  }
 0x254   :  { %1289 = vmatpush1.bf16.msra.mxu1 %v4524_v51  ;;  %v3801_v51 = vld [vmem:[%s5473_s2 + $0x4] sm:$0x3] }
 0x255   :  { %1290 = vmatprep.subr.bf16.mxu1 %v4529_v53 }
 0x258   :  { %1291 = vmatpush1.bf16.msra.mxu1 %v4527_v55  ;;  %v1108_v55 = vrot.slane %v3801_v51, %v5008_v52 }
 0x259   :  { %1292 = vmatprep.subr.bf16.mxu1 %v4532_v56  ;;  %v1112_v56 = vrot.slane %v3801_v51, %v5013_v54  ;;  %v4618_v51 = vld [vmem:[#allocation2 + $0x370] ss:$8 sps:$4 sm:$0xff]  }
 0x25c   :  { %1293 = vmatpush1.bf16.msra.mxu1 %v4530_v57 }
 0x25d   :  { %1294 = vmatprep.subr.bf16.mxu1 %v4535_v58 }
 0x260   :  { %1295 = vmatpush1.bf16.msra.mxu1 %v4533_v59 }
 0x261   :  { %1296 = vmatprep.subr.bf16.mxu1 %v4538_v60 }
 0x264   :  { %1297 = vmatpush1.bf16.msra.mxu1 %v4536_v61 }
 0x265   :  { %1298 = vmatprep.subr.bf16.mxu1 %v4541_v62 }
 0x268   :  { %1299 = vmatpush1.bf16.msra.mxu1 %v4539_v63 }
 0x269   :  { %1300 = vmatprep.subr.bf16.mxu1 %v4544_v0 }
 0x26c   :  { %1301 = vmatpush1.bf16.msra.mxu1 %v4542_v1 }
 0x26d   :  { %1302 = vmatprep.subr.bf16.mxu1 %v4547_v2 }
 0x270   :  { %1303 = vmatpush1.bf16.msra.mxu1 %v4545_v3 }
 0x271   :  { %1304 = vmatprep.subr.bf16.mxu1 %v4550_v4  ;;  %v4581_v4 = vld [vmem:[%s5474_s3 + $0x140] sm:$0xff]  }
 0x274   :  { %1305 = vmatpush1.bf16.msra.mxu1 %v4548_v5  ;;  %v3836_v5 = vld [vmem:[%s5476_s5 + $0x4] sm:$0x3] }
 0x275   :  { %1306 = vmatprep.subr.bf16.mxu1 %v4553_v6  ;;  %v4582_v6 = vld [vmem:[%s5474_s3 + $0x100] sm:$0xff]  }
 0x278   :  { %1307 = vmatpush1.bf16.msra.mxu1 %v4551_v7  ;;  %v4583_v7 = vld [vmem:[%s5474_s3 + $0x148] sm:$0xff]  }
 0x279   :  { %1308 = vmatprep.subr.bf16.mxu1 %v4556_v8  ;;  %v4584_v8 = vld [vmem:[%s5474_s3 + $0x108] sm:$0xff]  }
 0x27c   :  { %1309 = vmatpush1.bf16.msra.mxu1 %v4554_v9  ;;  %v4585_v9 = vld [vmem:[%s5474_s3 + $0x150] sm:$0xff]  }
 0x27d   :  { %1310 = vmatprep.subr.bf16.mxu1 %v4559_v10  ;;  %v4586_v10 = vld [vmem:[%s5474_s3 + $0x110] sm:$0xff]  }
 0x280   :  { %1311 = vmatpush1.bf16.msra.mxu1 %v4557_v11  ;;  %v4587_v11 = vld [vmem:[%s5474_s3 + $0x158] sm:$0xff]  }
 0x281   :  { %1312 = vmatprep.subr.bf16.mxu1 %v4562_v12  ;;  %v4588_v12 = vld [vmem:[%s5474_s3 + $0x118] sm:$0xff]  }
 0x284   :  { %1313 = vmatpush1.bf16.msra.mxu1 %v4560_v13  ;;  %v4589_v13 = vld [vmem:[%s5474_s3 + $0x160] sm:$0xff]  }
 0x287   :  { %1315 = vmatmul.mubr.bf16.vlgmr.msra.gmra.mrb[8].mxu1 %v3802_v16  ;;  %v4592_v16 = vld [vmem:[%s5474_s3 + $0x128] sm:$0xff]  }
 0x2da   :  { %v4256_v17 = vpop.f32.mrb[0].mxu1 }
 0x2db   :  { %v4257_v18 = vpop.f32.mrb[1].mxu1 }
 0x2dc   :  { %v5040_v19 = vadd.f32 %v4257_v18, %v4256_v17  ;;  %v4259_v20 = vpop.f32.mrb[2].mxu1  ;;  %v4593_v17 = vld [vmem:[%s5474_s3 + $0x170] sm:$0xff]  }
 0x2dd   :  { %v4260_v21 = vpop.f32.mrb[3].mxu1  ;;  %v4594_v18 = vld [vmem:[%s5474_s3 + $0x130] sm:$0xff]   ;;  %v4595_v20 = vld [vmem:[%s5474_s3 + $0x178] sm:$0xff]  }
 0x2de   :  { %v4596_v21 = vld [vmem:[%s5474_s3 + $0x138] sm:$0xff]  }
 0x31a   :  { %v801_v25 = vpop.f32.mrb[4].mxu1 }
 0x31b   :  { %v802_v26 = vadd.f32 %v801_v25, %v593_v23  ;;  %v803_v27 = vpop.f32.mrb[5].mxu1  ;;  %v3695_v23 = vld [vmem:[%s5475_s4] ss:$0 sm:$0xff] }
 0x31c   :  { %v804_v28 = vadd.f32 %v803_v27, %v597_v24  ;;  %v805_v29 = vpop.f32.mrb[6].mxu1 }
 0x31d   :  { %v806_v30 = vpop.f32.mrb[7].mxu1  ;;  %v808_v33 = vmax.f32 %v802_v26, 0.0  ;;  %v547_v26 = vadd.f32 %v5040_v19, %v3695_v23  ;;  %v4600_v19 = vld [vmem:[#allocation2 + $0x310] ss:$8 sps:$4 sm:$0xff]  }
 0x31e   :  { %v809_v31 = vmax.f32 %v804_v28, 0.0 }
 0x320   :  { %815 = vmatprep.subr.mxu0 %v809_v31  ;;  %v5166_v31 = vld [vmem:[%s5471_s0 + $0x18] sm:$0xff] }
 0x321   :  { %816 = vmatpush1.msra.mxu0 %v808_v33 }
 0x322   :  { %3749 = vmatmul.mubr.msk.f32.vlgmr.msra.gmra.mrb[6].mxu0 %vm300_vm0, %v3748_v34  ;;  %4262 = vmatprep.subr.bf16.mxu0 %v4565_v32 }
 0x323   :  { %4263 = vmatpush3.bf16.msra.mxu0 %v4566_v36  ;;  %v4597_v36 = vld [vmem:[#allocation2 + $0x300] ss:$8 sps:$4 sm:$0xff]  }
 0x324   :  { %4264 = vmatprep.subr.bf16.mxu0 %v4567_v37  ;;  %v3891_v37 = vcombine.high %v5166_v31, %v5166_v31 }
 0x327   :  { %4265 = vmatpush3.bf16.msra.mxu0 %v4568_v38 }
 0x328   :  { %4266 = vmatprep.subr.bf16.mxu0 %v4569_v39  ;;  %v4602_v39 = vld [vmem:[#allocation2 + $0x314] ss:$8 sps:$4 sm:$0xff]  }
 0x32b   :  { %4267 = vmatpush3.bf16.msra.mxu0 %v4570_v40  ;;  %v4605_v40 = vld [vmem:[#allocation2 + $0x324] ss:$8 sps:$4 sm:$0xff]  }
 0x32c   :  { %4268 = vmatprep.subr.bf16.mxu0 %v4571_v41  ;;  %v4603_v41 = vld [vmem:[#allocation2 + $0x320] ss:$8 sps:$4 sm:$0xff]  }
 0x32f   :  { %4269 = vmatpush3.bf16.msra.mxu0 %v4572_v42  ;;  %v4608_v42 = vld [vmem:[#allocation2 + $0x334] ss:$8 sps:$4 sm:$0xff]  }
 0x330   :  { %4270 = vmatprep.subr.bf16.mxu0 %v4573_v43  ;;  %v4606_v43 = vld [vmem:[#allocation2 + $0x330] ss:$8 sps:$4 sm:$0xff]  }
 0x333   :  { %4271 = vmatpush3.bf16.msra.mxu0 %v4574_v44  ;;  %v4611_v44 = vld [vmem:[#allocation2 + $0x344] ss:$8 sps:$4 sm:$0xff]  }
 0x334   :  { %4272 = vmatprep.subr.bf16.mxu0 %v4575_v45  ;;  %v4609_v45 = vld [vmem:[#allocation2 + $0x340] ss:$8 sps:$4 sm:$0xff]  }
 0x337   :  { %4273 = vmatpush3.bf16.msra.mxu0 %v4576_v46  ;;  %v4614_v46 = vld [vmem:[#allocation2 + $0x354] ss:$8 sps:$4 sm:$0xff]  }
 0x338   :  { %4274 = vmatprep.subr.bf16.mxu0 %v4577_v47  ;;  %v4612_v47 = vld [vmem:[#allocation2 + $0x350] ss:$8 sps:$4 sm:$0xff]  }
 0x33b   :  { %4275 = vmatpush3.bf16.msra.mxu0 %v4578_v48  ;;  %v4617_v48 = vld [vmem:[#allocation2 + $0x364] ss:$8 sps:$4 sm:$0xff]  }
 0x33c   :  { %4276 = vmatprep.subr.bf16.mxu0 %v4579_v49  ;;  %v4615_v49 = vld [vmem:[#allocation2 + $0x360] ss:$8 sps:$4 sm:$0xff]  }
 0x33f   :  { %4277 = vmatpush3.bf16.msra.mxu0 %v4580_v50  ;;  %v4620_v50 = vld [vmem:[#allocation2 + $0x374] ss:$8 sps:$4 sm:$0xff]  }
 0x35a   :  { %v1316_v53 = vpop.f32.mrb[8].mxu1 }
 0x35b   :  { %v1318_v57 = vpop.f32.mrb[9].mxu1  ;;  %v1317_v59 = vadd.f32 %v1316_v53, %v1108_v55  ;;  %v4623_v53 = vld [vmem:[#allocation2 + $0x384] ss:$8 sps:$4 sm:$0xff]   ;;  %v4621_v55 = vld [vmem:[#allocation2 + $0x380] ss:$8 sps:$4 sm:$0xff]  }
 0x35c   :  { %v1320_v58 = vpop.f32.mrb[10].mxu1  ;;  %v1319_v60 = vadd.f32 %v1318_v57, %v1112_v56  ;;  %v4626_v56 = vld [vmem:[#allocation2 + $0x394] ss:$8 sps:$4 sm:$0xff]   ;;  %v4624_v57 = vld [vmem:[#allocation2 + $0x390] ss:$8 sps:$4 sm:$0xff]  }
 0x35d   :  { %v1321_v61 = vpop.f32.mrb[11].mxu1  ;;  %v1323_v2 = vmax.f32 %v1317_v59, 0.0  ;;  %v4629_v58 = vld [vmem:[#allocation2 + $0x3a4] ss:$8 sps:$4 sm:$0xff]   ;;  %v4627_v59 = vld [vmem:[#allocation2 + $0x3a0] ss:$8 sps:$4 sm:$0xff]  }
 0x35e   :  { %v1324_v62 = vmax.f32 %v1319_v60, 0.0  ;;  %v4632_v60 = vld [vmem:[#allocation2 + $0x3b4] ss:$8 sps:$4 sm:$0xff]   ;;  %v4630_v61 = vld [vmem:[#allocation2 + $0x3b0] ss:$8 sps:$4 sm:$0xff]  }
 0x360   :  { %1330 = vmatprep.subr.mxu0 %v1324_v62  ;;  %v4635_v62 = vld [vmem:[#allocation2 + $0x3c4] ss:$8 sps:$4 sm:$0xff]  }
 0x3f5   :  { %v881_v63 = vpop.f32.mrb[6].mxu0 }
 0x3f6   :  { %v883_v0 = vpop.f32.mrb[7].mxu0  ;;  %v886_v3 = vpack.c.bf16 %v881_v63, %v881_v63  ;;  %v4633_v63 = vld [vmem:[#allocation2 + $0x3c0] ss:$8 sps:$4 sm:$0xff]  }
 0x3f7   :  { %v887_v1 = vpack.c.bf16 %v883_v0, %v883_v0  ;;  %v4638_v0 = vld [vmem:[#allocation2 + $0x3d4] ss:$8 sps:$4 sm:$0xff]  }
 0x3f9   :  { %1049 = vmatprep.mubr.bf16.mxu0 %v887_v1  ;;  %v4636_v1 = vld [vmem:[#allocation2 + $0x3d0] ss:$8 sps:$4 sm:$0xff]  }
 0x3fa   :  { %1050 = vmatmul.mubr.bf16.vlgmr.msra.gmra.mrb[8].mxu0 %v886_v3  ;;  %v4639_v3 = vld [vmem:[#allocation2 + $0x3e0] ss:$8 sps:$4 sm:$0xff]  }
 0x3fb   :  { %1331 = vmatpush1.msra.mxu0 %v1323_v2  ;;  %1394 = vmatprep.mubr.f32.mxu0 %v4912_v35  ;;  %v4641_v2 = vld [vmem:[#allocation2 + $0x3e4] ss:$8 sps:$4 sm:$0xff]  }
 0x3fc   :  { %4284 = vmatprep.subr.bf16.mxu0 %v4581_v4  ;;  %v4644_v4 = vld [vmem:[#allocation2 + $0x3f4] ss:$8 sps:$4 sm:$0xff]  }
 0x402   :  { %3837 = vmatmul.mubr.msk.f32.vlgmr.msra.gmra.mrb[12].mxu0 %vm300_vm0, %v3836_v5  ;;  %v4642_v5 = vld [vmem:[#allocation2 + $0x3f0] ss:$8 sps:$4 sm:$0xff]  }
 0x403   :  { %4285 = vmatpush3.bf16.msra.mxu0 %v4582_v6  ;;  %v3890_v6 = vcombine.low %v5166_v31, %v5166_v31  ;;  %v3889_v31 = vld [vmem:[%s5473_s2 + $0x6] sm:$0x3] }
 0x404   :  { %4286 = vmatprep.subr.bf16.mxu0 %v4583_v7  ;;  %v4647_v7 = vld [vmem:[%s5474_s3 + $0x1c0] sm:$0xff]  }
 0x405   :  { %4306 = vmatprep.subr.bf16.mxu1 %v4647_v7  ;;  %v4690_v7 = vld [vmem:[#allocation2 + $0x490] ss:$8 sps:$4 sm:$0xff]  }
 0x407   :  { %4287 = vmatpush3.bf16.msra.mxu0 %v4584_v8  ;;  %v4648_v8 = vld [vmem:[%s5474_s3 + $0x180] sm:$0xff]  }
 0x408   :  { %4288 = vmatprep.subr.bf16.mxu0 %v4585_v9  ;;  %v4649_v9 = vld [vmem:[%s5474_s3 + $0x1c8] sm:$0xff]   ;;  %4307 = vmatpush3.bf16.msra.mxu1 %v4648_v8 }
 0x409   :  { %4308 = vmatprep.subr.bf16.mxu1 %v4649_v9  ;;  %v4695_v8 = vld [vmem:[#allocation2 + $0x4a4] ss:$8 sps:$4 sm:$0xff]   ;;  %v4693_v9 = vld [vmem:[#allocation2 + $0x4a0] ss:$8 sps:$4 sm:$0xff]  }
 0x40b   :  { %4289 = vmatpush3.bf16.msra.mxu0 %v4586_v10  ;;  %v4650_v10 = vld [vmem:[%s5474_s3 + $0x188] sm:$0xff]  }
 0x40c   :  { %4290 = vmatprep.subr.bf16.mxu0 %v4587_v11  ;;  %v4651_v11 = vld [vmem:[%s5474_s3 + $0x1d0] sm:$0xff]   ;;  %4309 = vmatpush3.bf16.msra.mxu1 %v4650_v10 }
 0x40d   :  { %4310 = vmatprep.subr.bf16.mxu1 %v4651_v11  ;;  %v4698_v10 = vld [vmem:[#allocation2 + $0x4b4] ss:$8 sps:$4 sm:$0xff]   ;;  %v4696_v11 = vld [vmem:[#allocation2 + $0x4b0] ss:$8 sps:$4 sm:$0xff]  }
 0x40f   :  { %4291 = vmatpush3.bf16.msra.mxu0 %v4588_v12  ;;  %v4652_v12 = vld [vmem:[%s5474_s3 + $0x190] sm:$0xff]  }
 0x410   :  { %4292 = vmatprep.subr.bf16.mxu0 %v4589_v13  ;;  %v4653_v13 = vld [vmem:[%s5474_s3 + $0x1d8] sm:$0xff]   ;;  %4311 = vmatpush3.bf16.msra.mxu1 %v4652_v12  ;;  %v4701_v12 = vld [vmem:[#allocation2 + $0x4c4] ss:$8 sps:$4 sm:$0xff]  }
 0x411   :  { %4312 = vmatprep.subr.bf16.mxu1 %v4653_v13  ;;  %v4699_v13 = vld [vmem:[#allocation2 + $0x4c0] ss:$8 sps:$4 sm:$0xff]  }
 0x413   :  { %4293 = vmatpush3.bf16.msra.mxu0 %v4590_v14  ;;  %v4654_v14 = vld [vmem:[%s5474_s3 + $0x198] sm:$0xff]  }
 0x414   :  { %4294 = vmatprep.subr.bf16.mxu0 %v4591_v15  ;;  %v4655_v15 = vld [vmem:[%s5474_s3 + $0x1e0] sm:$0xff]   ;;  %4313 = vmatpush3.bf16.msra.mxu1 %v4654_v14  ;;  %v4704_v14 = vld [vmem:[#allocation2 + $0x4d4] ss:$8 sps:$4 sm:$0xff]  }
 0x415   :  { %4314 = vmatprep.subr.bf16.mxu1 %v4655_v15  ;;  %v4702_v15 = vld [vmem:[#allocation2 + $0x4d0] ss:$8 sps:$4 sm:$0xff]  }
 0x417   :  { %4295 = vmatpush3.bf16.msra.mxu0 %v4592_v16  ;;  %v4656_v16 = vld [vmem:[%s5474_s3 + $0x1a0] sm:$0xff]  }
 0x418   :  { %4296 = vmatprep.subr.bf16.mxu0 %v4593_v17  ;;  %v4657_v17 = vld [vmem:[%s5474_s3 + $0x1e8] sm:$0xff]   ;;  %4315 = vmatpush3.bf16.msra.mxu1 %v4656_v16 }
 0x419   :  { %4316 = vmatprep.subr.bf16.mxu1 %v4657_v17  ;;  %v4707_v16 = vld [vmem:[#allocation2 + $0x4e4] ss:$8 sps:$4 sm:$0xff]   ;;  %v4705_v17 = vld [vmem:[#allocation2 + $0x4e0] ss:$8 sps:$4 sm:$0xff]  }
 0x41b   :  { %4297 = vmatpush3.bf16.msra.mxu0 %v4594_v18  ;;  %v4658_v18 = vld [vmem:[%s5474_s3 + $0x1a8] sm:$0xff]  }
 0x41c   :  { %4298 = vmatprep.subr.bf16.mxu0 %v4595_v20  ;;  %v4659_v20 = vld [vmem:[%s5474_s3 + $0x1f0] sm:$0xff]   ;;  %4317 = vmatpush3.bf16.msra.mxu1 %v4658_v18 }
 0x41d   :  { %4318 = vmatprep.subr.bf16.mxu1 %v4659_v20  ;;  %v4710_v18 = vld [vmem:[#allocation2 + $0x4f4] ss:$8 sps:$4 sm:$0xff]   ;;  %v4708_v20 = vld [vmem:[#allocation2 + $0x4f0] ss:$8 sps:$4 sm:$0xff]  }
 0x41f   :  { %4299 = vmatpush3.bf16.msra.mxu0 %v4596_v21  ;;  %v4660_v21 = vld [vmem:[%s5474_s3 + $0x1b0] sm:$0xff]  }
 0x420   :  { %1797 = vmatprep.subr.bf16.mxu0 %v4599_v22  ;;  %4319 = vmatpush3.bf16.msra.mxu1 %v4660_v21  ;;  %v3799_v22 = vld [vmem:[%s5475_s4 + $0x1] ss:$0 sm:$0xff] }
 0x4cd   :  { %v4278_v24 = vpop.f32.mrb[8].mxu0 }
 0x4ce   :  { %v4279_v25 = vpop.f32.mrb[9].mxu0 }
 0x4cf   :  { %v4280_v27 = vadd.f32 %v4279_v25, %v4278_v24  ;;  %v4281_v28 = vpop.f32.mrb[10].mxu0 }
 0x4d0   :  { %v4282_v29 = vpop.f32.mrb[11].mxu0 }
 0x4d1   :  { %v5161_v30 = vadd.f32 %v4280_v27, %v547_v26 }
 0x4d3   :  { %v1066_v25 = vadd.f32 %v3799_v22, %v5161_v30  ;;  %v3887_v22 = vld [vmem:[%s5475_s4 + $0x2] ss:$0 sm:$0xff] }
 0x4d5   :  { %v1396_v32 = vpop.f32.mrb[12].mxu0 }
 0x4d6   :  { %v1398_v33 = vpop.f32.mrb[13].mxu0  ;;  %v1401_v38 = vpack.c.bf16 %v1396_v32, %v1396_v32  ;;  %v1623_v32 = vrot.slane %v3889_v31, %v5008_v52 }
 0x4d7   :  { %v1402_v34 = vpack.c.bf16 %v1398_v33, %v1398_v33  ;;  %v1627_v33 = vrot.slane %v3889_v31, %v5013_v54 }
 0x4d9   :  { %1564 = vmatprep.mubr.bf16.mxu0 %v1402_v34 }
 0x4da   :  { %1565 = vmatmul.mubr.bf16.vlgmr.msra.gmra.mrb[16].mxu0 %v1401_v38 }
 0x4db   :  { %1798 = vmatpush1.bf16.msra.mxu0 %v4597_v36  ;;  %1829 = vmatprep.mubr.bf16.mxu0 %v3891_v37 }
 0x4dc   :  { %1799 = vmatprep.subr.bf16.mxu0 %v4602_v39 }
 0x4df   :  { %1800 = vmatpush1.bf16.msra.mxu0 %v4600_v19 }
 0x4e0   :  { %1801 = vmatprep.subr.bf16.mxu0 %v4605_v40 }
 0x4e3   :  { %1802 = vmatpush1.bf16.msra.mxu0 %v4603_v41  ;;  %v3924_v41 = vld [vmem:[%s5476_s5 + $0x6] sm:$0x3] }
 0x4e4   :  { %1803 = vmatprep.subr.bf16.mxu0 %v4608_v42  ;;  %v4661_v42 = vld [vmem:[%s5474_s3 + $0x1f8] sm:$0xff]  }
 0x4e5   :  { %4320 = vmatprep.subr.bf16.mxu1 %v4661_v42  ;;  %v4012_v42 = vld [vmem:[%s5476_s5 + $0x8] sm:$0x3] }
 0x4e7   :  { %1804 = vmatpush1.bf16.msra.mxu0 %v4606_v43  ;;  %v4662_v43 = vld [vmem:[%s5474_s3 + $0x1b8] sm:$0xff]  }
 0x4e8   :  { %1805 = vmatprep.subr.bf16.mxu0 %v4611_v44  ;;  %4321 = vmatpush3.bf16.msra.mxu1 %v4662_v43  ;;  %v4665_v44 = vld [vmem:[#allocation2 + $0x404] ss:$8 sps:$4 sm:$0xff]  }
 0x4e9   :  { %2312 = vmatprep.subr.bf16.mxu1 %v4665_v44  ;;  %v4714_v43 = vld [vmem:[%s5474_s3 + $0x200] sm:$0xff]   ;;  %v4715_v44 = vld [vmem:[%s5474_s3 + $0x248] sm:$0xff]  }
 0x4eb   :  { %1806 = vmatpush1.bf16.msra.mxu0 %v4609_v45  ;;  %v5240_v45 = vld [vmem:[%s5471_s0 + $0x20] sm:$0xff] }
 0x4ec   :  { %1807 = vmatprep.subr.bf16.mxu0 %v4614_v46  ;;  %v3978_v21 = vcombine.low %v5240_v45, %v5240_v45 }
 0x4ef   :  { %1808 = vmatpush1.bf16.msra.mxu0 %v4612_v47 }
 0x4f0   :  { %1809 = vmatprep.subr.bf16.mxu0 %v4617_v48 }
 0x4f3   :  { %1810 = vmatpush1.bf16.msra.mxu0 %v4615_v49  ;;  %v4663_v49 = vld [vmem:[#allocation2 + $0x400] ss:$8 sps:$4 sm:$0xff]  }
 0x4f4   :  { %1811 = vmatprep.subr.bf16.mxu0 %v4620_v50  ;;  %v3979_v50 = vcombine.high %v5240_v45, %v5240_v45  ;;  %v4716_v45 = vld [vmem:[%s5474_s3 + $0x208] sm:$0xff]  }
 0x4f7   :  { %1812 = vmatpush1.bf16.msra.mxu0 %v4618_v51 }
 0x4f8   :  { %1813 = vmatprep.subr.bf16.mxu0 %v4623_v53  ;;  %v4668_v53 = vld [vmem:[#allocation2 + $0x414] ss:$8 sps:$4 sm:$0xff]  }
 0x4fb   :  { %1814 = vmatpush1.bf16.msra.mxu0 %v4621_v55  ;;  %v4666_v55 = vld [vmem:[#allocation2 + $0x410] ss:$8 sps:$4 sm:$0xff]  }
 0x4fc   :  { %1815 = vmatprep.subr.bf16.mxu0 %v4626_v56  ;;  %v4671_v56 = vld [vmem:[#allocation2 + $0x424] ss:$8 sps:$4 sm:$0xff]  }
 0x4ff   :  { %1816 = vmatpush1.bf16.msra.mxu0 %v4624_v57  ;;  %v4669_v57 = vld [vmem:[#allocation2 + $0x420] ss:$8 sps:$4 sm:$0xff]  }
 0x500   :  { %1817 = vmatprep.subr.bf16.mxu0 %v4629_v58  ;;  %v4674_v58 = vld [vmem:[#allocation2 + $0x434] ss:$8 sps:$4 sm:$0xff]  }
 0x503   :  { %1818 = vmatpush1.bf16.msra.mxu0 %v4627_v59  ;;  %v4672_v59 = vld [vmem:[#allocation2 + $0x430] ss:$8 sps:$4 sm:$0xff]  }
 0x504   :  { %1819 = vmatprep.subr.bf16.mxu0 %v4632_v60  ;;  %v4677_v60 = vld [vmem:[#allocation2 + $0x444] ss:$8 sps:$4 sm:$0xff]  }
 0x507   :  { %1820 = vmatpush1.bf16.msra.mxu0 %v4630_v61  ;;  %v4675_v61 = vld [vmem:[#allocation2 + $0x440] ss:$8 sps:$4 sm:$0xff]  }
 0x508   :  { %1821 = vmatprep.subr.bf16.mxu0 %v4635_v62  ;;  %v4680_v62 = vld [vmem:[#allocation2 + $0x454] ss:$8 sps:$4 sm:$0xff]  }
 0x50b   :  { %1822 = vmatpush1.bf16.msra.mxu0 %v4633_v63  ;;  %v4678_v63 = vld [vmem:[#allocation2 + $0x450] ss:$8 sps:$4 sm:$0xff]  }
 0x50c   :  { %1823 = vmatprep.subr.bf16.mxu0 %v4638_v0  ;;  %v4683_v0 = vld [vmem:[#allocation2 + $0x464] ss:$8 sps:$4 sm:$0xff]  }
 0x50f   :  { %1824 = vmatpush1.bf16.msra.mxu0 %v4636_v1  ;;  %v4681_v1 = vld [vmem:[#allocation2 + $0x460] ss:$8 sps:$4 sm:$0xff]  }
 0x510   :  { %1825 = vmatprep.subr.bf16.mxu0 %v4641_v2  ;;  %v4686_v2 = vld [vmem:[#allocation2 + $0x474] ss:$8 sps:$4 sm:$0xff]  }
 0x513   :  { %1826 = vmatpush1.bf16.msra.mxu0 %v4639_v3  ;;  %v4684_v3 = vld [vmem:[#allocation2 + $0x470] ss:$8 sps:$4 sm:$0xff]  }
 0x514   :  { %1827 = vmatprep.subr.bf16.mxu0 %v4644_v4  ;;  %v4689_v4 = vld [vmem:[#allocation2 + $0x484] ss:$8 sps:$4 sm:$0xff]  }
 0x517   :  { %1828 = vmatpush1.bf16.msra.mxu0 %v4642_v5  ;;  %v4687_v5 = vld [vmem:[#allocation2 + $0x480] ss:$8 sps:$4 sm:$0xff]  }
 0x51a   :  { %1830 = vmatmul.mubr.bf16.vlgmr.msra.gmra.mrb[20].mxu0 %v3890_v6  ;;  %v4692_v6 = vld [vmem:[#allocation2 + $0x494] ss:$8 sps:$4 sm:$0xff]  }
 0x51b   :  { %1909 = vmatprep.mubr.f32.mxu0 %v4912_v35 }
 0x5ad   :  { %v4300_v23 = vpop.f32.mrb[16].mxu0 }
 0x5ae   :  { %v4301_v24 = vpop.f32.mrb[17].mxu0 }
 0x5af   :  { %v4302_v26 = vadd.f32 %v4301_v24, %v4300_v23  ;;  %v4303_v27 = vpop.f32.mrb[18].mxu0 }
 0x5b0   :  { %v4304_v28 = vpop.f32.mrb[19].mxu0 }
 0x5b1   :  { %v5219_v29 = vadd.f32 %v4302_v26, %v1066_v25 }
 0x5b3   :  { %v1581_v25 = vadd.f32 %v3887_v22, %v5219_v29  ;;  %v4756_v22 = vld [vmem:[#allocation2 + $0x590] ss:$8 sps:$4 sm:$0xff]  }
 0x5ed   :  { %v1831_v34 = vpop.f32.mrb[20].mxu0 }
 0x5ee   :  { %v1832_v36 = vadd.f32 %v1831_v34, %v1623_v32  ;;  %v1833_v37 = vpop.f32.mrb[21].mxu0  ;;  %v3977_v32 = vld [vmem:[%s5473_s2 + $0x8] sm:$0x3] }
 0x5ef   :  { %v1834_v38 = vadd.f32 %v1833_v37, %v1627_v33  ;;  %v1835_v39 = vpop.f32.mrb[22].mxu0  ;;  %v2138_v33 = vrot.slane %v3977_v32, %v5008_v52  ;;  %v2142_v34 = vrot.slane %v3977_v32, %v5013_v54  ;;  %v4770_v32 = vld [vmem:[#allocation2 + $0x5d4] ss:$8 sps:$4 sm:$0xff]  }
 0x5f0   :  { %v1836_v19 = vpop.f32.mrb[23].mxu0  ;;  %v1838_v40 = vmax.f32 %v1832_v36, 0.0 }
 0x5f1   :  { %v1839_v30 = vmax.f32 %v1834_v38, 0.0 }
 0x5f3   :  { %1845 = vmatprep.subr.mxu0 %v1839_v30 }
 0x5f4   :  { %1846 = vmatpush1.msra.mxu0 %v1838_v40  ;;  %v4713_v40 = vld [vmem:[%s5474_s3 + $0x240] sm:$0xff]  }
 0x5f5   :  { %3925 = vmatmul.mubr.msk.f32.vlgmr.msra.gmra.mrb[14].mxu0 %vm300_vm0, %v3924_v41 }
 0x5f6   :  { %2424 = vmatprep.mubr.f32.mxu0 %v4912_v35 }
 0x6c8   :  { %v1911_v46 = vpop.f32.mrb[14].mxu0 }
 0x6c9   :  { %v1913_v47 = vpop.f32.mrb[15].mxu0  ;;  %v1916_v51 = vpack.c.bf16 %v1911_v46, %v1911_v46  ;;  %v4717_v46 = vld [vmem:[%s5474_s3 + $0x250] sm:$0xff]  }
 0x6ca   :  { %v1917_v48 = vpack.c.bf16 %v1913_v47, %v1913_v47  ;;  %v4718_v47 = vld [vmem:[%s5474_s3 + $0x210] sm:$0xff]  }
 0x6cc   :  { %2079 = vmatprep.mubr.bf16.mxu1 %v1917_v48  ;;  %v4719_v48 = vld [vmem:[%s5474_s3 + $0x258] sm:$0xff]  }
 0x6cd   :  { %2080 = vmatmul.mubr.bf16.vlgmr.msra.gmra.mrb[12].mxu1 %v1916_v51  ;;  %v4722_v51 = vld [vmem:[%s5474_s3 + $0x220] sm:$0xff]  }
 0x6ce   :  { %2313 = vmatpush1.bf16.msra.mxu1 %v4663_v49  ;;  %2344 = vmatprep.mubr.bf16.mxu1 %v3979_v50  ;;  %v4720_v49 = vld [vmem:[%s5474_s3 + $0x218] sm:$0xff]   ;;  %v4721_v50 = vld [vmem:[%s5474_s3 + $0x260] sm:$0xff]  }
 0x6cf   :  { %2314 = vmatprep.subr.bf16.mxu1 %v4668_v53  ;;  %v4723_v53 = vld [vmem:[%s5474_s3 + $0x268] sm:$0xff]  }
 0x6d2   :  { %2315 = vmatpush1.bf16.msra.mxu1 %v4666_v55  ;;  %v4724_v55 = vld [vmem:[%s5474_s3 + $0x228] sm:$0xff]  }
 0x6d3   :  { %2316 = vmatprep.subr.bf16.mxu1 %v4671_v56  ;;  %v4725_v56 = vld [vmem:[%s5474_s3 + $0x270] sm:$0xff]  }
 0x6d6   :  { %2317 = vmatpush1.bf16.msra.mxu1 %v4669_v57  ;;  %v4726_v57 = vld [vmem:[%s5474_s3 + $0x230] sm:$0xff]  }
 0x6d7   :  { %2318 = vmatprep.subr.bf16.mxu1 %v4674_v58  ;;  %v4727_v58 = vld [vmem:[%s5474_s3 + $0x278] sm:$0xff]  }
 0x6da   :  { %2319 = vmatpush1.bf16.msra.mxu1 %v4672_v59  ;;  %v4728_v59 = vld [vmem:[%s5474_s3 + $0x238] sm:$0xff]  }
 0x6db   :  { %2320 = vmatprep.subr.bf16.mxu1 %v4677_v60  ;;  %v4731_v60 = vld [vmem:[#allocation2 + $0x504] ss:$8 sps:$4 sm:$0xff]  }
 0x6de   :  { %2321 = vmatpush1.bf16.msra.mxu1 %v4675_v61  ;;  %v5313_v61 = vld [vmem:[%s5471_s0 + $0x28] sm:$0xff] }
 0x6df   :  { %2322 = vmatprep.subr.bf16.mxu1 %v4680_v62 }
 0x6e2   :  { %2323 = vmatpush1.bf16.msra.mxu1 %v4678_v63 }
 0x6e3   :  { %2324 = vmatprep.subr.bf16.mxu1 %v4683_v0 }
 0x6e6   :  { %2325 = vmatpush1.bf16.msra.mxu1 %v4681_v1  ;;  %v4729_v1 = vld [vmem:[#allocation2 + $0x500] ss:$8 sps:$4 sm:$0xff]  }
 0x6e7   :  { %2326 = vmatprep.subr.bf16.mxu1 %v4686_v2  ;;  %v4067_v2 = vcombine.high %v5313_v61, %v5313_v61 }
 0x6ea   :  { %2327 = vmatpush1.bf16.msra.mxu1 %v4684_v3 }
 0x6eb   :  { %2328 = vmatprep.subr.bf16.mxu1 %v4689_v4  ;;  %v4734_v4 = vld [vmem:[#allocation2 + $0x514] ss:$8 sps:$4 sm:$0xff]  }
 0x6ee   :  { %2329 = vmatpush1.bf16.msra.mxu1 %v4687_v5  ;;  %v4732_v5 = vld [vmem:[#allocation2 + $0x510] ss:$8 sps:$4 sm:$0xff]  }
 0x6ef   :  { %2330 = vmatprep.subr.bf16.mxu1 %v4692_v6  ;;  %v4737_v6 = vld [vmem:[#allocation2 + $0x524] ss:$8 sps:$4 sm:$0xff]  }
 0x6f2   :  { %2331 = vmatpush1.bf16.msra.mxu1 %v4690_v7  ;;  %v4735_v7 = vld [vmem:[#allocation2 + $0x520] ss:$8 sps:$4 sm:$0xff]  }
 0x6f3   :  { %2332 = vmatprep.subr.bf16.mxu1 %v4695_v8  ;;  %v4740_v8 = vld [vmem:[#allocation2 + $0x534] ss:$8 sps:$4 sm:$0xff]  }
 0x6f6   :  { %2333 = vmatpush1.bf16.msra.mxu1 %v4693_v9  ;;  %v4738_v9 = vld [vmem:[#allocation2 + $0x530] ss:$8 sps:$4 sm:$0xff]  }
 0x6f7   :  { %2334 = vmatprep.subr.bf16.mxu1 %v4698_v10  ;;  %v4743_v10 = vld [vmem:[#allocation2 + $0x544] ss:$8 sps:$4 sm:$0xff]  }
 0x6fa   :  { %2335 = vmatpush1.bf16.msra.mxu1 %v4696_v11  ;;  %v4741_v11 = vld [vmem:[#allocation2 + $0x540] ss:$8 sps:$4 sm:$0xff]  }
 0x6fb   :  { %2336 = vmatprep.subr.bf16.mxu1 %v4701_v12  ;;  %v4746_v12 = vld [vmem:[#allocation2 + $0x554] ss:$8 sps:$4 sm:$0xff]  }
 0x6fe   :  { %2337 = vmatpush1.bf16.msra.mxu1 %v4699_v13  ;;  %v4744_v13 = vld [vmem:[#allocation2 + $0x550] ss:$8 sps:$4 sm:$0xff]  }
 0x6ff   :  { %2338 = vmatprep.subr.bf16.mxu1 %v4704_v14  ;;  %v4749_v14 = vld [vmem:[#allocation2 + $0x564] ss:$8 sps:$4 sm:$0xff]  }
 0x702   :  { %2339 = vmatpush1.bf16.msra.mxu1 %v4702_v15  ;;  %v4747_v15 = vld [vmem:[#allocation2 + $0x560] ss:$8 sps:$4 sm:$0xff]  }
 0x703   :  { %2340 = vmatprep.subr.bf16.mxu1 %v4707_v16  ;;  %v4752_v16 = vld [vmem:[#allocation2 + $0x574] ss:$8 sps:$4 sm:$0xff]  }
 0x706   :  { %2341 = vmatpush1.bf16.msra.mxu1 %v4705_v17  ;;  %v4750_v17 = vld [vmem:[#allocation2 + $0x570] ss:$8 sps:$4 sm:$0xff]  }
 0x707   :  { %2342 = vmatprep.subr.bf16.mxu1 %v4710_v18  ;;  %v4755_v18 = vld [vmem:[#allocation2 + $0x584] ss:$8 sps:$4 sm:$0xff]  }
 0x70a   :  { %2343 = vmatpush1.bf16.msra.mxu1 %v4708_v20  ;;  %v4753_v20 = vld [vmem:[#allocation2 + $0x580] ss:$8 sps:$4 sm:$0xff]  }
 0x70d   :  { %2345 = vmatmul.mubr.bf16.vlgmr.msra.gmra.mrb[16].mxu1 %v3978_v21  ;;  %v4758_v21 = vld [vmem:[#allocation2 + $0x594] ss:$8 sps:$4 sm:$0xff]  }
 0x70e   :  { %2939 = vmatprep.mubr.f32.mxu1 %v4912_v35 }
 0x7a0   :  { %v4322_v23 = vpop.f32.mrb[12].mxu1 }
 0x7a1   :  { %v4323_v24 = vpop.f32.mrb[13].mxu1 }
 0x7a2   :  { %v4324_v26 = vadd.f32 %v4323_v24, %v4322_v23  ;;  %v4325_v27 = vpop.f32.mrb[14].mxu1  ;;  %v4761_v23 = vld [vmem:[#allocation2 + $0x5a4] ss:$8 sps:$4 sm:$0xff]   ;;  %v4759_v24 = vld [vmem:[#allocation2 + $0x5a0] ss:$8 sps:$4 sm:$0xff]  }
 0x7a3   :  { %v4326_v28 = vpop.f32.mrb[15].mxu1  ;;  %v4767_v27 = vld [vmem:[#allocation2 + $0x5c4] ss:$8 sps:$4 sm:$0xff]  }
 0x7a4   :  { %v5251_v31 = vadd.f32 %v4324_v26, %v1581_v25  ;;  %v4764_v25 = vld [vmem:[#allocation2 + $0x5b4] ss:$8 sps:$4 sm:$0xff]   ;;  %v4762_v26 = vld [vmem:[#allocation2 + $0x5b0] ss:$8 sps:$4 sm:$0xff]   ;;  %v4765_v28 = vld [vmem:[#allocation2 + $0x5c0] ss:$8 sps:$4 sm:$0xff]  }
 0x7e0   :  { %v2346_v36 = vpop.f32.mrb[16].mxu1 }
 0x7e1   :  { %v2347_v37 = vadd.f32 %v2346_v36, %v2138_v33  ;;  %v2348_v38 = vpop.f32.mrb[17].mxu1  ;;  %v4768_v33 = vld [vmem:[#allocation2 + $0x5d0] ss:$8 sps:$4 sm:$0xff]   ;;  %v4771_v36 = vld [vmem:[#allocation2 + $0x5e0] ss:$8 sps:$4 sm:$0xff]  }
 0x7e2   :  { %v2349_v39 = vadd.f32 %v2348_v38, %v2142_v34  ;;  %v2350_v19 = vpop.f32.mrb[18].mxu1  ;;  %v4773_v34 = vld [vmem:[#allocation2 + $0x5e4] ss:$8 sps:$4 sm:$0xff]   ;;  %v4774_v38 = vld [vmem:[#allocation2 + $0x5f0] ss:$8 sps:$4 sm:$0xff]  }
 0x7e3   :  { %v2351_v30 = vpop.f32.mrb[19].mxu1  ;;  %v2353_v41 = vmax.f32 %v2347_v37, 0.0  ;;  %v4776_v37 = vld [vmem:[#allocation2 + $0x5f4] ss:$8 sps:$4 sm:$0xff]   ;;  %v3975_v19 = vld [vmem:[%s5475_s4 + $0x3] ss:$0 sm:$0xff] }
 0x7e4   :  { %v2354_v29 = vmax.f32 %v2349_v39, 0.0  ;;  %v4066_v39 = vcombine.low %v5313_v61, %v5313_v61  ;;  %v4783_v61 = vld [vmem:[%s5474_s3 + $0x2d0] sm:$0xff]  }
 0x7e6   :  { %2360 = vmatprep.subr.mxu0 %v2354_v29 }
 0x7e7   :  { %2361 = vmatpush1.msra.mxu0 %v2353_v41 }
 0x7e8   :  { %4013 = vmatmul.mubr.msk.f32.vlgmr.msra.gmra.mrb[24].mxu0 %vm300_vm0, %v4012_v42  ;;  %4328 = vmatprep.subr.bf16.mxu0 %v4713_v40  ;;  %v2096_v40 = vadd.f32 %v3975_v19, %v5251_v31  ;;  %v4827_v19 = vld [vmem:[#allocation2 + $0x6a4] ss:$8 sps:$4 sm:$0xff]  }
 0x7e9   :  { %4329 = vmatpush3.bf16.msra.mxu0 %v4714_v43 }
 0x7ea   :  { %4330 = vmatprep.subr.bf16.mxu0 %v4715_v44 }
 0x7ed   :  { %4331 = vmatpush3.bf16.msra.mxu0 %v4716_v45  ;;  %v4065_v45 = vld [vmem:[%s5473_s2 + $0xa] sm:$0x3] }
 0x7ee   :  { %4332 = vmatprep.subr.bf16.mxu0 %v4717_v46  ;;  %v2653_v46 = vrot.slane %v4065_v45, %v5008_v52 }
 0x7f1   :  { %4333 = vmatpush3.bf16.msra.mxu0 %v4718_v47 }
 0x7f2   :  { %4334 = vmatprep.subr.bf16.mxu0 %v4719_v48 }
 0x7f5   :  { %4335 = vmatpush3.bf16.msra.mxu0 %v4720_v49 }
 0x7f6   :  { %4336 = vmatprep.subr.bf16.mxu0 %v4721_v50 }
 0x7f9   :  { %4337 = vmatpush3.bf16.msra.mxu0 %v4722_v51 }
 0x7fa   :  { %4338 = vmatprep.subr.bf16.mxu0 %v4723_v53 }
 0x7fd   :  { %4339 = vmatpush3.bf16.msra.mxu0 %v4724_v55  ;;  %v4779_v55 = vld [vmem:[%s5474_s3 + $0x2c0] sm:$0xff]  }
 0x7fe   :  { %4340 = vmatprep.subr.bf16.mxu0 %v4725_v56 }
 0x801   :  { %4341 = vmatpush3.bf16.msra.mxu0 %v4726_v57  ;;  %v4100_v57 = vld [vmem:[%s5476_s5 + $0xa] sm:$0x3] }
 0x802   :  { %4342 = vmatprep.subr.bf16.mxu0 %v4727_v58  ;;  %v4780_v58 = vld [vmem:[%s5474_s3 + $0x280] sm:$0xff]  }
 0x805   :  { %4343 = vmatpush3.bf16.msra.mxu0 %v4728_v59  ;;  %v4781_v59 = vld [vmem:[%s5474_s3 + $0x2c8] sm:$0xff]  }
 0x806   :  { %2827 = vmatprep.subr.bf16.mxu0 %v4731_v60  ;;  %v4782_v60 = vld [vmem:[%s5474_s3 + $0x288] sm:$0xff]  }
 0x8bb   :  { %v2426_v62 = vpop.f32.mrb[24].mxu0 }
 0x8bc   :  { %v2428_v63 = vpop.f32.mrb[25].mxu0  ;;  %v2431_v3 = vpack.c.bf16 %v2426_v62, %v2426_v62  ;;  %v4784_v62 = vld [vmem:[%s5474_s3 + $0x290] sm:$0xff]  }
 0x8bd   :  { %v2432_v0 = vpack.c.bf16 %v2428_v63, %v2428_v63  ;;  %v4785_v63 = vld [vmem:[%s5474_s3 + $0x2d8] sm:$0xff]  }
 0x8bf   :  { %2594 = vmatprep.mubr.bf16.mxu0 %v2432_v0  ;;  %v4786_v0 = vld [vmem:[%s5474_s3 + $0x298] sm:$0xff]  }
 0x8c0   :  { %2595 = vmatmul.mubr.bf16.vlgmr.msra.gmra.mrb[28].mxu0 %v2431_v3  ;;  %v4789_v3 = vld [vmem:[%s5474_s3 + $0x2e8] sm:$0xff]  }
 0x8c1   :  { %2828 = vmatpush1.bf16.msra.mxu0 %v4729_v1  ;;  %2859 = vmatprep.mubr.bf16.mxu0 %v4067_v2  ;;  %v4787_v1 = vld [vmem:[%s5474_s3 + $0x2e0] sm:$0xff]  }
 0x8c2   :  { %2829 = vmatprep.subr.bf16.mxu0 %v4734_v4  ;;  %v4788_v2 = vld [vmem:[%s5474_s3 + $0x2a0] sm:$0xff]   ;;  %v4790_v4 = vld [vmem:[%s5474_s3 + $0x2a8] sm:$0xff]  }
 0x8c5   :  { %2830 = vmatpush1.bf16.msra.mxu0 %v4732_v5  ;;  %v4791_v5 = vld [vmem:[%s5474_s3 + $0x2f0] sm:$0xff]  }
 0x8c6   :  { %2831 = vmatprep.subr.bf16.mxu0 %v4737_v6  ;;  %v4792_v6 = vld [vmem:[%s5474_s3 + $0x2b0] sm:$0xff]  }
 0x8c9   :  { %2832 = vmatpush1.bf16.msra.mxu0 %v4735_v7  ;;  %v4793_v7 = vld [vmem:[%s5474_s3 + $0x2f8] sm:$0xff]  }
 0x8ca   :  { %2833 = vmatprep.subr.bf16.mxu0 %v4740_v8  ;;  %v4794_v8 = vld [vmem:[%s5474_s3 + $0x2b8] sm:$0xff]  }
 0x8cd   :  { %2834 = vmatpush1.bf16.msra.mxu0 %v4738_v9  ;;  %v4797_v9 = vld [vmem:[#allocation2 + $0x604] ss:$8 sps:$4 sm:$0xff]  }
 0x8ce   :  { %2835 = vmatprep.subr.bf16.mxu0 %v4743_v10  ;;  %v5386_v10 = vld [vmem:[%s5471_s0 + $0x30] sm:$0xff] }
 0x8d1   :  { %2836 = vmatpush1.bf16.msra.mxu0 %v4741_v11 }
 0x8d2   :  { %2837 = vmatprep.subr.bf16.mxu0 %v4746_v12 }
 0x8d5   :  { %2838 = vmatpush1.bf16.msra.mxu0 %v4744_v13 }
 0x8d6   :  { %2839 = vmatprep.subr.bf16.mxu0 %v4749_v14  ;;  %v4795_v14 = vld [vmem:[#allocation2 + $0x600] ss:$8 sps:$4 sm:$0xff]  }
 0x8d9   :  { %2840 = vmatpush1.bf16.msra.mxu0 %v4747_v15  ;;  %v4155_v15 = vcombine.high %v5386_v10, %v5386_v10 }
 0x8da   :  { %2841 = vmatprep.subr.bf16.mxu0 %v4752_v16 }
 0x8dd   :  { %2842 = vmatpush1.bf16.msra.mxu0 %v4750_v17  ;;  %v4800_v17 = vld [vmem:[#allocation2 + $0x614] ss:$8 sps:$4 sm:$0xff]  }
 0x8de   :  { %2843 = vmatprep.subr.bf16.mxu0 %v4755_v18  ;;  %v4798_v18 = vld [vmem:[#allocation2 + $0x610] ss:$8 sps:$4 sm:$0xff]  }
 0x8e1   :  { %2844 = vmatpush1.bf16.msra.mxu0 %v4753_v20  ;;  %v4803_v20 = vld [vmem:[#allocation2 + $0x624] ss:$8 sps:$4 sm:$0xff]  }
 0x8e2   :  { %2845 = vmatprep.subr.bf16.mxu0 %v4758_v21  ;;  %v4801_v21 = vld [vmem:[#allocation2 + $0x620] ss:$8 sps:$4 sm:$0xff]  }
 0x8e5   :  { %2846 = vmatpush1.bf16.msra.mxu0 %v4756_v22  ;;  %v4806_v22 = vld [vmem:[#allocation2 + $0x634] ss:$8 sps:$4 sm:$0xff]  }
 0x8e6   :  { %2847 = vmatprep.subr.bf16.mxu0 %v4761_v23  ;;  %v4804_v23 = vld [vmem:[#allocation2 + $0x630] ss:$8 sps:$4 sm:$0xff]  }
 0x8e9   :  { %2848 = vmatpush1.bf16.msra.mxu0 %v4759_v24  ;;  %v4809_v24 = vld [vmem:[#allocation2 + $0x644] ss:$8 sps:$4 sm:$0xff]  }
 0x8ea   :  { %2849 = vmatprep.subr.bf16.mxu0 %v4764_v25  ;;  %v4807_v25 = vld [vmem:[#allocation2 + $0x640] ss:$8 sps:$4 sm:$0xff]  }
 0x8ed   :  { %2850 = vmatpush1.bf16.msra.mxu0 %v4762_v26  ;;  %v4812_v26 = vld [vmem:[#allocation2 + $0x654] ss:$8 sps:$4 sm:$0xff]  }
 0x8ee   :  { %2851 = vmatprep.subr.bf16.mxu0 %v4767_v27  ;;  %v4810_v27 = vld [vmem:[#allocation2 + $0x650] ss:$8 sps:$4 sm:$0xff]  }
 0x8f1   :  { %2852 = vmatpush1.bf16.msra.mxu0 %v4765_v28  ;;  %v4815_v28 = vld [vmem:[#allocation2 + $0x664] ss:$8 sps:$4 sm:$0xff]  }
 0x8f2   :  { %2853 = vmatprep.subr.bf16.mxu0 %v4770_v32  ;;  %v4813_v32 = vld [vmem:[#allocation2 + $0x660] ss:$8 sps:$4 sm:$0xff]  }
 0x8f5   :  { %2854 = vmatpush1.bf16.msra.mxu0 %v4768_v33  ;;  %v4818_v33 = vld [vmem:[#allocation2 + $0x674] ss:$8 sps:$4 sm:$0xff]  }
 0x8f6   :  { %2855 = vmatprep.subr.bf16.mxu0 %v4773_v34  ;;  %v4816_v34 = vld [vmem:[#allocation2 + $0x670] ss:$8 sps:$4 sm:$0xff]  }
 0x8f9   :  { %2856 = vmatpush1.bf16.msra.mxu0 %v4771_v36  ;;  %v4821_v36 = vld [vmem:[#allocation2 + $0x684] ss:$8 sps:$4 sm:$0xff]  }
 0x8fa   :  { %2857 = vmatprep.subr.bf16.mxu0 %v4776_v37  ;;  %v4819_v37 = vld [vmem:[#allocation2 + $0x680] ss:$8 sps:$4 sm:$0xff]  }
 0x8fd   :  { %2858 = vmatpush1.bf16.msra.mxu0 %v4774_v38  ;;  %v4824_v38 = vld [vmem:[#allocation2 + $0x694] ss:$8 sps:$4 sm:$0xff]  }
 0x900   :  { %2860 = vmatmul.mubr.bf16.vlgmr.msra.gmra.mrb[32].mxu0 %v4066_v39  ;;  %v4822_v39 = vld [vmem:[#allocation2 + $0x690] ss:$8 sps:$4 sm:$0xff]  }
 0x901   :  { %3454 = vmatprep.mubr.f32.mxu0 %v4912_v35  ;;  %v2657_v35 = vrot.slane %v4065_v45, %v5013_v54  ;;  %v4834_v45 = vld [vmem:[#allocation2 + $0x6d0] ss:$8 sps:$4 sm:$0xff]  }
 0x993   :  { %v4344_v30 = vpop.f32.mrb[28].mxu0 }
 0x994   :  { %v4345_v29 = vpop.f32.mrb[29].mxu0 }
 0x995   :  { %v4346_v41 = vadd.f32 %v4345_v29, %v4344_v30  ;;  %v4347_v42 = vpop.f32.mrb[30].mxu0  ;;  %v4825_v30 = vld [vmem:[#allocation2 + $0x6a0] ss:$8 sps:$4 sm:$0xff]   ;;  %v4830_v29 = vld [vmem:[#allocation2 + $0x6b4] ss:$8 sps:$4 sm:$0xff]  }
 0x996   :  { %v4348_v43 = vpop.f32.mrb[31].mxu0  ;;  %v4831_v42 = vld [vmem:[#allocation2 + $0x6c0] ss:$8 sps:$4 sm:$0xff]  }
 0x997   :  { %v5324_v44 = vadd.f32 %v4346_v41, %v2096_v40  ;;  %v4828_v40 = vld [vmem:[#allocation2 + $0x6b0] ss:$8 sps:$4 sm:$0xff]   ;;  %v4833_v41 = vld [vmem:[#allocation2 + $0x6c4] ss:$8 sps:$4 sm:$0xff]   ;;  %v4836_v43 = vld [vmem:[#allocation2 + $0x6d4] ss:$8 sps:$4 sm:$0xff]  }
 0x9d3   :  { %v2861_v47 = vpop.f32.mrb[32].mxu0 }
 0x9d4   :  { %v2862_v48 = vadd.f32 %v2861_v47, %v2653_v46  ;;  %v2863_v49 = vpop.f32.mrb[33].mxu0  ;;  %v4839_v46 = vld [vmem:[#allocation2 + $0x6e4] ss:$8 sps:$4 sm:$0xff]   ;;  %v4842_v47 = vld [vmem:[#allocation2 + $0x6f4] ss:$8 sps:$4 sm:$0xff]  }
 0x9d5   :  { %v2864_v50 = vadd.f32 %v2863_v49, %v2657_v35  ;;  %v2865_v51 = vpop.f32.mrb[34].mxu0  ;;  %v4837_v35 = vld [vmem:[#allocation2 + $0x6e0] ss:$8 sps:$4 sm:$0xff]   ;;  %v4154_v49 = vcombine.low %v5386_v10, %v5386_v10  ;;  %v4851_v10 = vld [vmem:[%s5474_s3 + $0x358] sm:$0xff]  }
 0x9d6   :  { %v2866_v53 = vpop.f32.mrb[35].mxu0  ;;  %v2868_v56 = vmax.f32 %v2862_v48, 0.0  ;;  %v4840_v48 = vld [vmem:[#allocation2 + $0x6f0] ss:$8 sps:$4 sm:$0xff]  }
 0x9d7   :  { %v2869_v31 = vmax.f32 %v2864_v50, 0.0  ;;  %v4063_v50 = vld [vmem:[%s5475_s4 + $0x4] ss:$0 sm:$0xff] }
 0x9d9   :  { %2875 = vmatprep.subr.mxu1 %v2869_v31  ;;  %v2611_v31 = vadd.f32 %v4063_v50, %v5324_v44  ;;  %v4845_v44 = vld [vmem:[%s5474_s3 + $0x340] sm:$0xff]  }
 0x9da   :  { %2876 = vmatpush1.msra.mxu1 %v2868_v56 }
 0x9db   :  { %4101 = vmatmul.mubr.msk.f32.vlgmr.msra.gmra.mrb[20].mxu1 %vm300_vm0, %v4100_v57  ;;  %4350 = vmatprep.subr.bf16.mxu1 %v4779_v55 }
 0x9dc   :  { %4351 = vmatpush3.bf16.msra.mxu1 %v4780_v58 }
 0x9dd   :  { %4352 = vmatprep.subr.bf16.mxu1 %v4781_v59  ;;  %v4153_v59 = vld [vmem:[%s5473_s2 + $0xc] sm:$0x3] }
 0x9e0   :  { %4353 = vmatpush3.bf16.msra.mxu1 %v4782_v60  ;;  %v3168_v60 = vrot.slane %v4153_v59, %v5008_v52  ;;  %v4846_v52 = vld [vmem:[%s5474_s3 + $0x300] sm:$0xff]  }
 0x9e1   :  { %4354 = vmatprep.subr.bf16.mxu1 %v4783_v61  ;;  %v3172_v61 = vrot.slane %v4153_v59, %v5013_v54  ;;  %v4847_v54 = vld [vmem:[%s5474_s3 + $0x348] sm:$0xff]  }
 0x9e4   :  { %4355 = vmatpush3.bf16.msra.mxu1 %v4784_v62 }
 0x9e5   :  { %4356 = vmatprep.subr.bf16.mxu1 %v4785_v63 }
 0x9e8   :  { %4357 = vmatpush3.bf16.msra.mxu1 %v4786_v0 }
 0x9e9   :  { %4358 = vmatprep.subr.bf16.mxu1 %v4787_v1 }
 0x9ec   :  { %4359 = vmatpush3.bf16.msra.mxu1 %v4788_v2 }
 0x9ed   :  { %4360 = vmatprep.subr.bf16.mxu1 %v4789_v3 }
 0x9f0   :  { %4361 = vmatpush3.bf16.msra.mxu1 %v4790_v4 }
 0x9f1   :  { %4362 = vmatprep.subr.bf16.mxu1 %v4791_v5 }
 0x9f4   :  { %4363 = vmatpush3.bf16.msra.mxu1 %v4792_v6  ;;  %v4188_v6 = vld [vmem:[%s5476_s5 + $0xc] sm:$0x3] }
 0x9f5   :  { %4364 = vmatprep.subr.bf16.mxu1 %v4793_v7  ;;  %v4848_v7 = vld [vmem:[%s5474_s3 + $0x308] sm:$0xff]  }
 0x9f8   :  { %4365 = vmatpush3.bf16.msra.mxu1 %v4794_v8  ;;  %v4849_v8 = vld [vmem:[%s5474_s3 + $0x350] sm:$0xff]  }
 0x9f9   :  { %3342 = vmatprep.subr.bf16.mxu1 %v4797_v9  ;;  %v4850_v9 = vld [vmem:[%s5474_s3 + $0x310] sm:$0xff]  }
 0xaae   :  { %v2941_v11 = vpop.f32.mrb[20].mxu1 }
 0xaaf   :  { %v2943_v12 = vpop.f32.mrb[21].mxu1  ;;  %v2946_v16 = vpack.c.bf16 %v2941_v11, %v2941_v11  ;;  %v4852_v11 = vld [vmem:[%s5474_s3 + $0x318] sm:$0xff]  }
 0xab0   :  { %v2947_v13 = vpack.c.bf16 %v2943_v12, %v2943_v12  ;;  %v4853_v12 = vld [vmem:[%s5474_s3 + $0x360] sm:$0xff]  }
 0xab2   :  { %3109 = vmatprep.mubr.bf16.mxu1 %v2947_v13  ;;  %v4854_v13 = vld [vmem:[%s5474_s3 + $0x320] sm:$0xff]  }
 0xab3   :  { %3110 = vmatmul.mubr.bf16.vlgmr.msra.gmra.mrb[24].mxu1 %v2946_v16  ;;  %v4857_v16 = vld [vmem:[%s5474_s3 + $0x370] sm:$0xff]  }
 0xab4   :  { %3343 = vmatpush1.bf16.msra.mxu1 %v4795_v14  ;;  %3374 = vmatprep.mubr.bf16.mxu1 %v4155_v15  ;;  %v4855_v14 = vld [vmem:[%s5474_s3 + $0x368] sm:$0xff]  }
 0xab5   :  { %3344 = vmatprep.subr.bf16.mxu1 %v4800_v17  ;;  %v4856_v15 = vld [vmem:[%s5474_s3 + $0x328] sm:$0xff]   ;;  %v4858_v17 = vld [vmem:[%s5474_s3 + $0x330] sm:$0xff]  }
 0xab8   :  { %3345 = vmatpush1.bf16.msra.mxu1 %v4798_v18  ;;  %v4859_v18 = vld [vmem:[%s5474_s3 + $0x378] sm:$0xff]  }
 0xab9   :  { %3346 = vmatprep.subr.bf16.mxu1 %v4803_v20  ;;  %v4860_v20 = vld [vmem:[%s5474_s3 + $0x338] sm:$0xff]   ;;  %s4913_s3 = smov [#allocation5]  }
 0xaba   :  { %s3651_s5 = sshll.u32 %s4913_s3, 4  ;;  %s3652_s5 = int_to_ptr.vmem [resolvable:$true] %s3651_s5 }
 0xabb   :  { %s4883_s1 = scalar_lea.vmem %s3652_s5, 32  ;;  %p4888_p9 = scmp.lt.s32.totalorder %s3652_s5, %s3652_s5 }
 0xabc   :  { %3347 = vmatpush1.bf16.msra.mxu1 %v4801_v21  ;;  %p4884_p8 = scmp.ne.s32.totalorder %s3652_s5, %s4883_s1  ;;  %p4889_p10 = scmp.lt.s32.totalorder %s4883_s1, %s4883_s1 }
 0xabd   :  { %3348 = vmatprep.subr.bf16.mxu1 %v4806_v22 }
 0xabe   :  { %p4890_p11 = por %p4889_p10, %p4888_p9 }
 0xac0   :  { %3349 = vmatpush1.bf16.msra.mxu1 %v4804_v23  ;;  %p4891_p12 = pnand %p4890_p11, %p4884_p8 }
 0xac1   :  { %3350 = vmatprep.subr.bf16.mxu1 %v4809_v24 }
 0xac4   :  { %3351 = vmatpush1.bf16.msra.mxu1 %v4807_v25  ;;  %v4151_v25 = vld [vmem:[%s5475_s4 + $0x5] ss:$0 sm:$0xff] }
 0xac5   :  { %3352 = vmatprep.subr.bf16.mxu1 %v4812_v26 }
 0xac8   :  { %3353 = vmatpush1.bf16.msra.mxu1 %v4810_v27 }
 0xac9   :  { %3354 = vmatprep.subr.bf16.mxu1 %v4815_v28 }
 0xacc   :  { %3355 = vmatpush1.bf16.msra.mxu1 %v4813_v32 }
 0xacd   :  { %3356 = vmatprep.subr.bf16.mxu1 %v4818_v33 }
 0xad0   :  { %3357 = vmatpush1.bf16.msra.mxu1 %v4816_v34  ;;  %v4239_v34 = vld [vmem:[%s5475_s4 + $0x6] ss:$0 sm:$0xff] }
 0xad1   :  { %3358 = vmatprep.subr.bf16.mxu1 %v4821_v36 }
 0xad4   :  { %3359 = vmatpush1.bf16.msra.mxu1 %v4819_v37 }
 0xad5   :  { %3360 = vmatprep.subr.bf16.mxu1 %v4824_v38  ;;  %v3642_v38 = vld [vmem:[#allocation5] sm:$0x3] }
 0xad8   :  { %3361 = vmatpush1.bf16.msra.mxu1 %v4822_v39 }
 0xad9   :  { %3362 = vmatprep.subr.bf16.mxu1 %v4827_v19 }
 0xadc   :  { %3363 = vmatpush1.bf16.msra.mxu1 %v4825_v30 }
 0xadd   :  { %3364 = vmatprep.subr.bf16.mxu1 %v4830_v29 }
 0xae0   :  { %3365 = vmatpush1.bf16.msra.mxu1 %v4828_v40 }
 0xae1   :  { %3366 = vmatprep.subr.bf16.mxu1 %v4833_v41 }
 0xae4   :  { %3367 = vmatpush1.bf16.msra.mxu1 %v4831_v42 }
 0xae5   :  { %3368 = vmatprep.subr.bf16.mxu1 %v4836_v43 }
 0xae8   :  { %3369 = vmatpush1.bf16.msra.mxu1 %v4834_v45 }
 0xae9   :  { %3370 = vmatprep.subr.bf16.mxu1 %v4839_v46 }
 0xaec   :  { %3371 = vmatpush1.bf16.msra.mxu1 %v4837_v35 }
 0xaed   :  { %3372 = vmatprep.subr.bf16.mxu1 %v4842_v47 }
 0xaf0   :  { %3373 = vmatpush1.bf16.msra.mxu1 %v4840_v48 }
 0xaf3   :  { %3375 = vmatmul.mubr.bf16.vlgmr.msra.gmra.mrb[28].mxu1 %v4154_v49 }
 0xb86   :  { %v4366_v51 = vpop.f32.mrb[24].mxu1 }
 0xb87   :  { %v4367_v53 = vpop.f32.mrb[25].mxu1 }
 0xb88   :  { %v4368_v55 = vadd.f32 %v4367_v53, %v4366_v51  ;;  %v4369_v56 = vpop.f32.mrb[26].mxu1 }
 0xb89   :  { %v4370_v57 = vpop.f32.mrb[27].mxu1 }
 0xb8a   :  { %v3117_v58 = vadd.f32 %v4368_v55, %v2611_v31 }
 0xb8c   :  { %v3126_v28 = vadd.f32 %v4151_v25, %v3117_v58 }
 0xbc6   :  { %v3376_v62 = vpop.f32.mrb[28].mxu1 }
 0xbc7   :  { %v3377_v63 = vadd.f32 %v3376_v62, %v3168_v60  ;;  %v3378_v0 = vpop.f32.mrb[29].mxu1 }
 0xbc8   :  { %v3379_v1 = vadd.f32 %v3378_v0, %v3172_v61  ;;  %v3380_v2 = vpop.f32.mrb[30].mxu1 }
 0xbc9   :  { %v3381_v3 = vpop.f32.mrb[31].mxu1  ;;  %v3383_v5 = vmax.f32 %v3377_v63, 0.0 }
 0xbca   :  { %v3384_v4 = vmax.f32 %v3379_v1, 0.0 }
 0xbcc   :  { %3390 = vmatprep.subr.mxu0 %v3384_v4 }
 0xbcd   :  { %3391 = vmatpush1.msra.mxu0 %v3383_v5 }
 0xbce   :  { %4189 = vmatmul.mubr.msk.f32.vlgmr.msra.gmra.mrb[26].mxu0 %vm300_vm0, %v4188_v6  ;;  %4372 = vmatprep.subr.bf16.mxu0 %v4845_v44 }
 0xbcf   :  { %4373 = vmatpush3.bf16.msra.mxu0 %v4846_v52 }
 0xbd0   :  { %4374 = vmatprep.subr.bf16.mxu0 %v4847_v54 }
 0xbd3   :  { %4375 = vmatpush3.bf16.msra.mxu0 %v4848_v7 }
 0xbd4   :  { %4376 = vmatprep.subr.bf16.mxu0 %v4849_v8 }
 0xbd7   :  { %4377 = vmatpush3.bf16.msra.mxu0 %v4850_v9 }
 0xbd8   :  { %4378 = vmatprep.subr.bf16.mxu0 %v4851_v10 }
 0xbdb   :  { %4379 = vmatpush3.bf16.msra.mxu0 %v4852_v11 }
 0xbdc   :  { %4380 = vmatprep.subr.bf16.mxu0 %v4853_v12 }
 0xbdf   :  { %4381 = vmatpush3.bf16.msra.mxu0 %v4854_v13 }
 0xbe0   :  { %4382 = vmatprep.subr.bf16.mxu0 %v4855_v14 }
 0xbe3   :  { %4383 = vmatpush3.bf16.msra.mxu0 %v4856_v15 }
 0xbe4   :  { %4384 = vmatprep.subr.bf16.mxu0 %v4857_v16 }
 0xbe7   :  { %4385 = vmatpush3.bf16.msra.mxu0 %v4858_v17 }
 0xbe8   :  { %4386 = vmatprep.subr.bf16.mxu0 %v4859_v18 }
 0xbeb   :  { %4387 = vmatpush3.bf16.msra.mxu0 %v4860_v20 }
 0xca1   :  { %v3456_v21 = vpop.f32.mrb[26].mxu0 }
 0xca2   :  { %v3458_v22 = vpop.f32.mrb[27].mxu0  ;;  %v3461_v24 = vpack.c.bf16 %v3456_v21, %v3456_v21 }
 0xca3   :  { %v3462_v23 = vpack.c.bf16 %v3458_v22, %v3458_v22 }
 0xca5   :  { %3624 = vmatprep.mubr.bf16.mxu0 %v3462_v23 }
 0xca6   :  { %3625 = vmatmul.mubr.bf16.vlgmr.msra.gmra.mrb[36].mxu0 %v3461_v24 }
 0xd79   :  { %v4388_v26 = vpop.f32.mrb[36].mxu0 }
 0xd7a   :  { %v4389_v27 = vpop.f32.mrb[37].mxu0 }
 0xd7b   :  { %v4390_v32 = vadd.f32 %v4389_v27, %v4388_v26  ;;  %v4391_v33 = vpop.f32.mrb[38].mxu0 }
 0xd7c   :  { %v4392_v36 = vpop.f32.mrb[39].mxu0 }
 0xd7d   :  { %v3632_v37 = vadd.f32 %v4390_v32, %v3126_v28 }
 0xd7f   :  { %v3641_v39 = vadd.f32 %v4239_v34, %v3632_v37 }
 0xd81   :  { %v3643_v19 = vadd.f32 %v3642_v38, %v3641_v39 }
 0xd83   :  { %3644 = vst [vmem:[#allocation5] sm:$0x3] %v3643_v19 }
 0xd84   :  { %4894 = shalt.err (!%p4891_p12)
}
 0xd85   :  { %s4895_s4 = scalar_lea.hbm %s5477_s6, 32 }
 0xd86   :  { %p4896_p13 = scmp.ne.s32.totalorder %s5477_s6, %s4895_s4  ;;  %p4899_p0 = scmp.lt.u32.totalorder %s4895_s4, %s5477_s6 }
 0xd88   :  { %p4901_p1 = pnand %p4899_p0, %p4896_p13 }
 0xd8a   :  { %4904 = shalt.err (!%p4901_p1)
}
 0xd8b   :  { %3654 = dma.vmem_to_hbm [thread:$0]  %s3652_s5, 32, %s5477_s6, [#allocation4]  }
 0xd8c   :  { %4907 = dma.done.wait [#allocation4], 32  }
 0xd8d   :  { %4908 = vsyncadd [#allocation4], 4294967264 }
 0xd8e   :  { %3658 = vsyncpa [#allocation3], 1 }
 0xd8f   :  { %3659 = vsyncpa [#allocation4], 1 }

</bundles_post_ra>
